<compile_context>
chip_gen: v7x
topology: tpu7x:2x2x1
jax: 0.10.0
libtpu: 0.0.40
codegen_flags: <defaults>
</compile_context>

<pallas_src>
import functools

import jax
import jax.numpy as jnp
from jax import lax
from jax.experimental import pallas as pl
from jax.experimental.pallas import tpu as pltpu


def _sparse_conv_block_kernel(xa_ref, m_ref, w_ref, b_ref, y_ref, mo_ref,
                              pmat_ref, *, kernel_size, stride, dilation,
                              out_h, out_w, cin, cout):
    """One batch element per grid step.

    xa_ref:   (1, Hp, Wp, Cin+1) bf16  zero-padded [x*m, m] (mask appended as last channel)
    m_ref:    (1, Hp, Wp)        f32   zero-padded mask (lane-dense, for the maxpool)
    w_ref:    (K*K*(Cin+1), Cout+1) bf16  augmented weights (last column counts the mask)
    b_ref:    (1, Cout)          f32
    y_ref:    (1, Cout, Ho*Wo)   f32   lane-dense transposed activations (NCHW after reshape)
    mo_ref:   (1, Ho, Wo)        f32   pooled mask
    pmat_ref: (Ho*Wo, K*K*(Cin+1)) bf16 VMEM scratch (im2col matrix)
    """
    cin1 = cin + 1
    n_pix = out_h * out_w

    xab = xa_ref[0]          # (Hp, Wp, Cin+1) bf16, mask already multiplied in
    m2 = m_ref[0]            # (Hp, Wp) f32

    # Maxpool accumulator; zero init is valid because the mask is non-negative and
    # (padding <= dilation*(K-1)) guarantees every window sees a valid pixel.
    mmax = jnp.zeros((out_h, out_w), jnp.float32)

    # Static loop over kernel taps: build the im2col matrix in VMEM scratch and
    # run the (lane-dense, 2-D) mask maxpool on the VPU.
    # TODO(synk): for stride > 1 on large images, pre-gather the strided rows once
    # instead of per-tap strided slices.
    for tap in range(kernel_size * kernel_size):
        kh = tap // kernel_size
        kw = tap % kernel_size
        h0 = kh * dilation
        w0 = kw * dilation
        h1 = h0 + (out_h - 1) * stride + 1
        w1 = w0 + (out_w - 1) * stride + 1

        patch = lax.slice(xab, (h0, w0, 0), (h1, w1, cin1),
                          (stride, stride, 1))                  # (Ho, Wo, Cin+1)
        pmat_ref[:, pl.ds(tap * cin1, cin1)] = patch.reshape(n_pix, cin1)

        mpatch = lax.slice(m2, (h0, w0), (h1, w1), (stride, stride))  # (Ho, Wo)
        mmax = jnp.maximum(mmax, mpatch)

    # ONE MXU matmul: columns [:Cout] are the conv outputs, column Cout is the
    # window-sum of the mask (thanks to the augmented input channel / weight column).
    out = jnp.dot(pmat_ref[...], w_ref[...],
                  preferred_element_type=jnp.float32)            # (Ho*Wo, Cout+1)
    acc = out[:, :cout]                                          # (Ho*Wo, Cout)
    cnt = out[:, cout:cout + 1]                                  # (Ho*Wo, 1)

    # F.conv2d(mask.expand_as(x), ones) == Cin * window-sum of the mask.
    denom = jnp.maximum(cnt * jnp.float32(cin), jnp.float32(1e-5))
    inv = pl.reciprocal(denom, approx=True)                      # EUP slot

    y = jnp.maximum(acc * inv + b_ref[...], 0.0)                 # (Ho*Wo, Cout), ReLU
    # Store transposed so the output lane dim is Ho*Wo (lane-dense, unmasked vst);
    # the wrapper reshape to NCHW is free.
    y_ref[0] = jnp.transpose(y, (1, 0)).astype(y_ref.dtype)      # (Cout, Ho*Wo)
    mo_ref[0] = mmax.astype(mo_ref.dtype)                        # (Ho, Wo)


def sparse_conv_block(x_nchw, m_nchw, weight_oihw, bias, *,
                      stride=1, padding=0, dilation=1):
    """Wrapper: NCHW in / NCHW out. conv + mask-normalization + bias + relu + maxpool."""
    N, Cin, H, W = x_nchw.shape
    Cout, Cin_w, KH, KW = weight_oihw.shape
    assert Cin_w == Cin and KH == KW
    assert m_nchw.shape == (N, 1, H, W)
    # Zero-padded maxpool == -inf-padded maxpool (PyTorch) for non-negative masks
    # as long as every pooling window overlaps at least one valid pixel.
    assert padding <= dilation * (KH - 1)

    K = KH
    out_h = (H + 2 * padding - dilation * (K - 1) - 1) // stride + 1
    out_w = (W + 2 * padding - dilation * (K - 1) - 1) // stride + 1
    Hp, Wp = H + 2 * padding, W + 2 * padding
    cin1 = Cin + 1
    n_pix = out_h * out_w

    x = jnp.transpose(x_nchw, (0, 2, 3, 1)).astype(jnp.float32)   # (N,H,W,Cin)
    m = m_nchw[:, 0].astype(jnp.float32)                          # (N,H,W)

    # Masked input with the mask appended as channel Cin (drives the count column).
    # bf16 is exact here because the mask is {0,1}. Single fused XLA prep pass.
    xa = jnp.concatenate([x * m[..., None], m[..., None]], axis=-1)
    xa = jnp.pad(xa, ((0, 0), (padding, padding), (padding, padding), (0, 0)))
    xa = xa.astype(jnp.bfloat16)                                  # (N,Hp,Wp,Cin+1)
    mp = jnp.pad(m, ((0, 0), (padding, padding), (padding, padding)))  # (N,Hp,Wp)

    # Augmented, flattened weights: (K*K*(Cin+1), Cout+1).
    # Rows for x-channels carry the conv weights; the mask-channel rows feed only
    # the extra count column (ones), so one matmul yields conv + mask window-sum.
    w_hwio = jnp.transpose(weight_oihw, (2, 3, 1, 0)).astype(jnp.float32)  # (K,K,Cin,Cout)
    w_aug = jnp.zeros((K * K, cin1, Cout + 1), jnp.float32)
    w_aug = w_aug.at[:, :Cin, :Cout].set(w_hwio.reshape(K * K, Cin, Cout))
    w_aug = w_aug.at[:, Cin, Cout].set(1.0)
    w_aug = w_aug.reshape(K * K * cin1, Cout + 1).astype(jnp.bfloat16)

    b = bias.reshape(1, Cout).astype(jnp.float32)

    kernel = functools.partial(
        _sparse_conv_block_kernel,
        kernel_size=K, stride=stride, dilation=dilation,
        out_h=out_h, out_w=out_w, cin=Cin, cout=Cout)

    flops = 2 * N * n_pix * (K * K * cin1) * (Cout + 1)
    bytes_accessed = (N * (Hp * Wp * cin1 * 2 + Hp * Wp * 4
                           + Cout * n_pix * 4 + n_pix * 4)
                      + w_aug.size * 2 + Cout * 4)

    # TODO(synk): add spatial (Ho) tiling with halo so a block fits v7x's 64 MiB VMEM
    # for large images and both v7x TensorCores get work when N is small.
    y, mo = pl.pallas_call(
        kernel,
        out_shape=(jax.ShapeDtypeStruct((N, Cout, n_pix), jnp.float32),
                   jax.ShapeDtypeStruct((N, out_h, out_w), jnp.float32)),
        grid_spec=pltpu.PrefetchScalarGridSpec(
            num_scalar_prefetch=0,
            grid=(N,),
            in_specs=[
                pl.BlockSpec((1, Hp, Wp, cin1), lambda n: (n, 0, 0, 0)),
                pl.BlockSpec((1, Hp, Wp), lambda n: (n, 0, 0)),
                pl.BlockSpec((K * K * cin1, Cout + 1), lambda n: (0, 0)),
                pl.BlockSpec((1, Cout), lambda n: (0, 0)),
            ],
            out_specs=[
                pl.BlockSpec((1, Cout, n_pix), lambda n: (n, 0, 0)),
                pl.BlockSpec((1, out_h, out_w), lambda n: (n, 0, 0)),
            ],
            scratch_shapes=[pltpu.VMEM((n_pix, K * K * cin1), jnp.bfloat16)],
        ),
        compiler_params=pltpu.CompilerParams(dimension_semantics=("parallel",)),
        cost_estimate=pl.CostEstimate(flops=flops, transcendentals=N * n_pix,
                                      bytes_accessed=bytes_accessed),
    )(xa, mp, w_aug, b)

    y_nchw = y.reshape(N, Cout, out_h, out_w)       # free reshape: already NCHW
    m_out_nchw = mo.reshape(N, 1, out_h, out_w)
    return y_nchw, m_out_nchw


def _reference(x, m, w_oihw, bias, *, stride, padding, dilation):
    """Pure-JAX reference mirroring the PyTorch module (f32, HIGHEST precision)."""
    mc = jnp.broadcast_to(m, x.shape)
    xm = x * mc
    dn = lax.conv_dimension_numbers(xm.shape, w_oihw.shape, ('NCHW', 'OIHW', 'NCHW'))
    conv = lax.conv_general_dilated(
        xm, w_oihw, (stride, stride), [(padding, padding)] * 2,
        rhs_dilation=(dilation, dilation), dimension_numbers=dn,
        precision=lax.Precision.HIGHEST)
    cnt = lax.conv_general_dilated(
        mc, jnp.ones_like(w_oihw), (stride, stride), [(padding, padding)] * 2,
        rhs_dilation=(dilation, dilation), dimension_numbers=dn,
        precision=lax.Precision.HIGHEST)
    cnt = jnp.maximum(cnt, 1e-5)
    y = conv / cnt + bias.reshape(1, -1, 1, 1)
    y = jnp.maximum(y, 0.0)
    KH = w_oihw.shape[2]
    m_out = lax.reduce_window(
        m, -jnp.inf, lax.max,
        window_dimensions=(1, 1, KH, KH),
        window_strides=(1, 1, stride, stride),
        padding=((0, 0), (0, 0), (padding, padding), (padding, padding)),
        window_dilation=(1, 1, dilation, dilation))
    return y, m_out


if __name__ == "__main__":
    # Small shapes consistent with the module: NCHW input + single-channel mask.
    N, Cin, H, W = 2, 4, 16, 16
    Cout, K, stride, padding, dilation = 8, 3, 1, 1, 1

    key = jax.random.PRNGKey(0)
    kx, km, kw = jax.random.split(key, 3)

    x = jax.random.normal(kx, (N, Cin, H, W), dtype=jnp.float32)
    m = jax.random.bernoulli(km, 0.7, (N, 1, H, W)).astype(jnp.float32)

    # Deterministic params matching nn.init.kaiming_normal_(mode='fan_out',
    # nonlinearity='relu'): std = sqrt(2 / (Cout*K*K)); bias initialized to zeros.
    fan_out = Cout * K * K
    weight = jax.random.normal(kw, (Cout, Cin, K, K), dtype=jnp.float32) * jnp.sqrt(2.0 / fan_out)
    bias = jnp.zeros((Cout,), dtype=jnp.float32)

    y, m_out = sparse_conv_block(x, m, weight, bias,
                                 stride=stride, padding=padding, dilation=dilation)
    jax.block_until_ready((y, m_out))

    # Sanity check against a pure-JAX reference of the PyTorch forward.
    y_ref, m_ref = _reference(x, m, weight, bias,
                              stride=stride, padding=padding, dilation=dilation)
    assert m_out.shape[1] == 1  # mirrors the module's assert
    assert jnp.allclose(y, y_ref, atol=5e-3, rtol=5e-3)
    assert jnp.allclose(m_out, m_ref)

    print("KERNEL_OK")
</pallas_src>

<mosaic_0001>
module attributes {stable_mosaic.version = 11 : i64} {
  func.func @_sparse_conv_block_kernel(%arg0: i32, %arg1: memref<1x18x18x5xbf16, #tpu.memory_space<vmem>>, %arg2: memref<1x18x18xf32, #tpu.memory_space<vmem>>, %arg3: memref<45x9xbf16, #tpu.memory_space<vmem>>, %arg4: memref<1x8xf32, #tpu.memory_space<vmem>>, %arg5: memref<1x8x256xf32, #tpu.memory_space<vmem>>, %arg6: memref<1x16x16xf32, #tpu.memory_space<vmem>>, %arg7: memref<256x45xbf16, #tpu.memory_space<vmem>>) attributes {dimension_semantics = [#tpu.dimension_semantics<parallel>], iteration_bounds = array<i64: 2>, scalar_prefetch = 0 : i64, scratch_operands = 1 : i64, tpu.core_type = #tpu.core_type<tc>, window_params = [{transform_indices = @transform_0, window_bounds = array<i64: 1, 18, 18, 5>}, {transform_indices = @transform_1, window_bounds = array<i64: 1, 18, 18>}, {pipeline_mode = #tpu.pipeline_mode<synchronous>, transform_indices = @transform_2, window_bounds = array<i64: 45, 9>}, {pipeline_mode = #tpu.pipeline_mode<synchronous>, transform_indices = @transform_3, window_bounds = array<i64: 1, 8>}, {transform_indices = @transform_4, window_bounds = array<i64: 1, 8, 256>}, {transform_indices = @transform_5, window_bounds = array<i64: 1, 16, 16>}]} {
    %c0 = arith.constant 0 : index
    %c0_0 = arith.constant 0 : index
    %c0_1 = arith.constant 0 : index
    %c0_2 = arith.constant 0 : index
    %0 = vector.load %arg1[%c0, %c0_0, %c0_1, %c0_2] : memref<1x18x18x5xbf16, #tpu.memory_space<vmem>>, vector<1x18x18x5xbf16>
    %1 = vector.shape_cast %0 : vector<1x18x18x5xbf16> to vector<18x18x5xbf16>
    %c0_3 = arith.constant 0 : index
    %c0_4 = arith.constant 0 : index
    %c0_5 = arith.constant 0 : index
    %2 = vector.load %arg2[%c0_3, %c0_4, %c0_5] : memref<1x18x18xf32, #tpu.memory_space<vmem>>, vector<1x18x18xf32>
    %3 = vector.shape_cast %2 : vector<1x18x18xf32> to vector<18x18xf32>
    %cst = arith.constant 0.000000e+00 : f32
    %4 = vector.broadcast %cst : f32 to vector<16x16xf32>
    %5 = vector.extract_strided_slice %1 {offsets = [0, 0, 0], sizes = [16, 16, 5], strides = [1, 1, 1]} : vector<18x18x5xbf16> to vector<16x16x5xbf16>
    %6 = vector.shape_cast %5 : vector<16x16x5xbf16> to vector<256x5xbf16>
    %c0_6 = arith.constant 0 : index
    %c0_7 = arith.constant 0 : index
    %7 = vector.load %arg7[%c0_6, %c0_7] : memref<256x45xbf16, #tpu.memory_space<vmem>>, vector<256x5xbf16>
    tpu.vector_store %arg7[%c0_6, %c0_7], %6 {strides = array<i32>} : memref<256x45xbf16, #tpu.memory_space<vmem>>, vector<256x5xbf16>,
    %8 = vector.extract_strided_slice %3 {offsets = [0, 0], sizes = [16, 16], strides = [1, 1]} : vector<18x18xf32> to vector<16x16xf32>
    %9 = arith.maximumf %4, %8 : vector<16x16xf32>
    %10 = vector.extract_strided_slice %1 {offsets = [0, 1, 0], sizes = [16, 16, 5], strides = [1, 1, 1]} : vector<18x18x5xbf16> to vector<16x16x5xbf16>
    %11 = vector.shape_cast %10 : vector<16x16x5xbf16> to vector<256x5xbf16>
    %c0_8 = arith.constant 0 : index
    %c5 = arith.constant 5 : index
    %12 = vector.load %arg7[%c0_8, %c5] : memref<256x45xbf16, #tpu.memory_space<vmem>>, vector<256x5xbf16>
    tpu.vector_store %arg7[%c0_8, %c5], %11 {strides = array<i32>} : memref<256x45xbf16, #tpu.memory_space<vmem>>, vector<256x5xbf16>,
    %13 = vector.extract_strided_slice %3 {offsets = [0, 1], sizes = [16, 16], strides = [1, 1]} : vector<18x18xf32> to vector<16x16xf32>
    %14 = arith.maximumf %9, %13 : vector<16x16xf32>
    %15 = vector.extract_strided_slice %1 {offsets = [0, 2, 0], sizes = [16, 16, 5], strides = [1, 1, 1]} : vector<18x18x5xbf16> to vector<16x16x5xbf16>
    %16 = vector.shape_cast %15 : vector<16x16x5xbf16> to vector<256x5xbf16>
    %c0_9 = arith.constant 0 : index
    %c10 = arith.constant 10 : index
    %17 = vector.load %arg7[%c0_9, %c10] : memref<256x45xbf16, #tpu.memory_space<vmem>>, vector<256x5xbf16>
    tpu.vector_store %arg7[%c0_9, %c10], %16 {strides = array<i32>} : memref<256x45xbf16, #tpu.memory_space<vmem>>, vector<256x5xbf16>,
    %18 = vector.extract_strided_slice %3 {offsets = [0, 2], sizes = [16, 16], strides = [1, 1]} : vector<18x18xf32> to vector<16x16xf32>
    %19 = arith.maximumf %14, %18 : vector<16x16xf32>
    %20 = vector.extract_strided_slice %1 {offsets = [1, 0, 0], sizes = [16, 16, 5], strides = [1, 1, 1]} : vector<18x18x5xbf16> to vector<16x16x5xbf16>
    %21 = vector.shape_cast %20 : vector<16x16x5xbf16> to vector<256x5xbf16>
    %c0_10 = arith.constant 0 : index
    %c15 = arith.constant 15 : index
    %22 = vector.load %arg7[%c0_10, %c15] : memref<256x45xbf16, #tpu.memory_space<vmem>>, vector<256x5xbf16>
    tpu.vector_store %arg7[%c0_10, %c15], %21 {strides = array<i32>} : memref<256x45xbf16, #tpu.memory_space<vmem>>, vector<256x5xbf16>,
    %23 = vector.extract_strided_slice %3 {offsets = [1, 0], sizes = [16, 16], strides = [1, 1]} : vector<18x18xf32> to vector<16x16xf32>
    %24 = arith.maximumf %19, %23 : vector<16x16xf32>
    %25 = vector.extract_strided_slice %1 {offsets = [1, 1, 0], sizes = [16, 16, 5], strides = [1, 1, 1]} : vector<18x18x5xbf16> to vector<16x16x5xbf16>
    %26 = vector.shape_cast %25 : vector<16x16x5xbf16> to vector<256x5xbf16>
    %c0_11 = arith.constant 0 : index
    %c20 = arith.constant 20 : index
    %27 = vector.load %arg7[%c0_11, %c20] : memref<256x45xbf16, #tpu.memory_space<vmem>>, vector<256x5xbf16>
    tpu.vector_store %arg7[%c0_11, %c20], %26 {strides = array<i32>} : memref<256x45xbf16, #tpu.memory_space<vmem>>, vector<256x5xbf16>,
    %28 = vector.extract_strided_slice %3 {offsets = [1, 1], sizes = [16, 16], strides = [1, 1]} : vector<18x18xf32> to vector<16x16xf32>
    %29 = arith.maximumf %24, %28 : vector<16x16xf32>
    %30 = vector.extract_strided_slice %1 {offsets = [1, 2, 0], sizes = [16, 16, 5], strides = [1, 1, 1]} : vector<18x18x5xbf16> to vector<16x16x5xbf16>
    %31 = vector.shape_cast %30 : vector<16x16x5xbf16> to vector<256x5xbf16>
    %c0_12 = arith.constant 0 : index
    %c25 = arith.constant 25 : index
    %32 = vector.load %arg7[%c0_12, %c25] : memref<256x45xbf16, #tpu.memory_space<vmem>>, vector<256x5xbf16>
    tpu.vector_store %arg7[%c0_12, %c25], %31 {strides = array<i32>} : memref<256x45xbf16, #tpu.memory_space<vmem>>, vector<256x5xbf16>,
    %33 = vector.extract_strided_slice %3 {offsets = [1, 2], sizes = [16, 16], strides = [1, 1]} : vector<18x18xf32> to vector<16x16xf32>
    %34 = arith.maximumf %29, %33 : vector<16x16xf32>
    %35 = vector.extract_strided_slice %1 {offsets = [2, 0, 0], sizes = [16, 16, 5], strides = [1, 1, 1]} : vector<18x18x5xbf16> to vector<16x16x5xbf16>
    %36 = vector.shape_cast %35 : vector<16x16x5xbf16> to vector<256x5xbf16>
    %c0_13 = arith.constant 0 : index
    %c30 = arith.constant 30 : index
    %37 = vector.load %arg7[%c0_13, %c30] : memref<256x45xbf16, #tpu.memory_space<vmem>>, vector<256x5xbf16>
    tpu.vector_store %arg7[%c0_13, %c30], %36 {strides = array<i32>} : memref<256x45xbf16, #tpu.memory_space<vmem>>, vector<256x5xbf16>,
    %38 = vector.extract_strided_slice %3 {offsets = [2, 0], sizes = [16, 16], strides = [1, 1]} : vector<18x18xf32> to vector<16x16xf32>
    %39 = arith.maximumf %34, %38 : vector<16x16xf32>
    %40 = vector.extract_strided_slice %1 {offsets = [2, 1, 0], sizes = [16, 16, 5], strides = [1, 1, 1]} : vector<18x18x5xbf16> to vector<16x16x5xbf16>
    %41 = vector.shape_cast %40 : vector<16x16x5xbf16> to vector<256x5xbf16>
    %c0_14 = arith.constant 0 : index
    %c35 = arith.constant 35 : index
    %42 = vector.load %arg7[%c0_14, %c35] : memref<256x45xbf16, #tpu.memory_space<vmem>>, vector<256x5xbf16>
    tpu.vector_store %arg7[%c0_14, %c35], %41 {strides = array<i32>} : memref<256x45xbf16, #tpu.memory_space<vmem>>, vector<256x5xbf16>,
    %43 = vector.extract_strided_slice %3 {offsets = [2, 1], sizes = [16, 16], strides = [1, 1]} : vector<18x18xf32> to vector<16x16xf32>
    %44 = arith.maximumf %39, %43 : vector<16x16xf32>
    %45 = vector.extract_strided_slice %1 {offsets = [2, 2, 0], sizes = [16, 16, 5], strides = [1, 1, 1]} : vector<18x18x5xbf16> to vector<16x16x5xbf16>
    %46 = vector.shape_cast %45 : vector<16x16x5xbf16> to vector<256x5xbf16>
    %c0_15 = arith.constant 0 : index
    %c40 = arith.constant 40 : index
    %47 = vector.load %arg7[%c0_15, %c40] : memref<256x45xbf16, #tpu.memory_space<vmem>>, vector<256x5xbf16>
    tpu.vector_store %arg7[%c0_15, %c40], %46 {strides = array<i32>} : memref<256x45xbf16, #tpu.memory_space<vmem>>, vector<256x5xbf16>,
    %48 = vector.extract_strided_slice %3 {offsets = [2, 2], sizes = [16, 16], strides = [1, 1]} : vector<18x18xf32> to vector<16x16xf32>
    %49 = arith.maximumf %44, %48 : vector<16x16xf32>
    %c0_16 = arith.constant 0 : index
    %c0_17 = arith.constant 0 : index
    %50 = vector.load %arg7[%c0_16, %c0_17] : memref<256x45xbf16, #tpu.memory_space<vmem>>, vector<256x45xbf16>
    %c0_18 = arith.constant 0 : index
    %c0_19 = arith.constant 0 : index
    %51 = vector.load %arg3[%c0_18, %c0_19] : memref<45x9xbf16, #tpu.memory_space<vmem>>, vector<45x9xbf16>
    %cst_20 = arith.constant dense<0.000000e+00> : vector<256x9xf32>
    %52 = tpu.matmul %50, %51, %cst_20 {dimension_numbers = #tpu.dot_dimension_numbers<[1], [0], [0], [1], [0, 0, 1, 1], [], []>} : vector<256x45xbf16>, vector<45x9xbf16>, vector<256x9xf32> -> vector<256x9xf32>
    %53 = vector.extract_strided_slice %52 {offsets = [0, 0], sizes = [256, 8], strides = [1, 1]} : vector<256x9xf32> to vector<256x8xf32>
    %54 = vector.extract_strided_slice %52 {offsets = [0, 8], sizes = [256, 1], strides = [1, 1]} : vector<256x9xf32> to vector<256x1xf32>
    %cst_21 = arith.constant 4.000000e+00 : f32
    %55 = vector.broadcast %cst_21 : f32 to vector<256x1xf32>
    %56 = arith.mulf %54, %55 : vector<256x1xf32>
    %cst_22 = arith.constant 9.99999974E-6 : f32
    %57 = vector.broadcast %cst_22 : f32 to vector<256x1xf32>
    %58 = arith.maximumf %56, %57 : vector<256x1xf32>
    %59 = tpu.reciprocal %58 {approx = true} : vector<256x1xf32> -> vector<256x1xf32>
    %60 = vector.broadcast %59 : vector<256x1xf32> to vector<256x8xf32>
    %61 = arith.mulf %53, %60 : vector<256x8xf32>
    %c0_23 = arith.constant 0 : index
    %c0_24 = arith.constant 0 : index
    %62 = vector.load %arg4[%c0_23, %c0_24] : memref<1x8xf32, #tpu.memory_space<vmem>>, vector<1x8xf32>
    %63 = vector.broadcast %62 : vector<1x8xf32> to vector<256x8xf32>
    %64 = arith.addf %61, %63 : vector<256x8xf32>
    %cst_25 = arith.constant 0.000000e+00 : f32
    %65 = vector.broadcast %cst_25 : f32 to vector<256x8xf32>
    %66 = arith.maximumf %64, %65 : vector<256x8xf32>
    %67 = tpu.transpose %66, [1, 0] : vector<256x8xf32> -> vector<8x256xf32>
    %c0_26 = arith.constant 0 : index
    %c0_27 = arith.constant 0 : index
    %c0_28 = arith.constant 0 : index
    %68 = vector.load %arg5[%c0_26, %c0_27, %c0_28] : memref<1x8x256xf32, #tpu.memory_space<vmem>>, vector<1x8x256xf32>
    %69 = vector.shape_cast %68 : vector<1x8x256xf32> to vector<8x256xf32>
    %70 = vector.shape_cast %67 : vector<8x256xf32> to vector<1x8x256xf32>
    tpu.vector_store %arg5[%c0_26, %c0_27, %c0_28], %70 {strides = array<i32>} : memref<1x8x256xf32, #tpu.memory_space<vmem>>, vector<1x8x256xf32>,
    %c0_29 = arith.constant 0 : index
    %c0_30 = arith.constant 0 : index
    %c0_31 = arith.constant 0 : index
    %71 = vector.load %arg6[%c0_29, %c0_30, %c0_31] : memref<1x16x16xf32, #tpu.memory_space<vmem>>, vector<1x16x16xf32>
    %72 = vector.shape_cast %71 : vector<1x16x16xf32> to vector<16x16xf32>
    %73 = vector.shape_cast %49 : vector<16x16xf32> to vector<1x16x16xf32>
    tpu.vector_store %arg6[%c0_29, %c0_30, %c0_31], %73 {strides = array<i32>} : memref<1x16x16xf32, #tpu.memory_space<vmem>>, vector<1x16x16xf32>,
    return
  }
  func.func @transform_0(%arg0: i32) -> (i32, i32, i32, i32) {
    %c0_i32 = arith.constant 0 : i32
    %c0_i32_0 = arith.constant 0 : i32
    %c0_i32_1 = arith.constant 0 : i32
    %c0_i32_2 = arith.constant 0 : i32
    return %arg0, %c0_i32, %c0_i32_0, %c0_i32_1 : i32, i32, i32, i32
  }
  func.func @transform_1(%arg0: i32) -> (i32, i32, i32) {
    %c0_i32 = arith.constant 0 : i32
    %c0_i32_0 = arith.constant 0 : i32
    %c0_i32_1 = arith.constant 0 : i32
    return %arg0, %c0_i32, %c0_i32_0 : i32, i32, i32
  }
  func.func @transform_2(%arg0: i32) -> (i32, i32) {
    %c0_i32 = arith.constant 0 : i32
    %c0_i32_0 = arith.constant 0 : i32
    %c0_i32_1 = arith.constant 0 : i32
    return %c0_i32, %c0_i32_0 : i32, i32
  }
  func.func @transform_3(%arg0: i32) -> (i32, i32) {
    %c0_i32 = arith.constant 0 : i32
    %c0_i32_0 = arith.constant 0 : i32
    %c0_i32_1 = arith.constant 0 : i32
    return %c0_i32, %c0_i32_0 : i32, i32
  }
  func.func @transform_4(%arg0: i32) -> (i32, i32, i32) {
    %c0_i32 = arith.constant 0 : i32
    %c0_i32_0 = arith.constant 0 : i32
    %c0_i32_1 = arith.constant 0 : i32
    return %arg0, %c0_i32, %c0_i32_0 : i32, i32, i32
  }
  func.func @transform_5(%arg0: i32) -> (i32, i32, i32) {
    %c0_i32 = arith.constant 0 : i32
    %c0_i32_0 = arith.constant 0 : i32
    %c0_i32_1 = arith.constant 0 : i32
    return %arg0, %c0_i32, %c0_i32_0 : i32, i32, i32
  }
}

</mosaic_0001>

<bundles_post_ra>
// kernel: tpu_custom_call.1
= control target key start
LH: loop header
LB: loop body
LE: loop exit
PB: predicated region body
PF: predicated region fallthrough
CT: control target
= control target key end

     0   :  { %11 = vsyncpa [#allocation4], 0  ;;  %s4398_s0 = inlined_call_operand.vmem [shape: bf16[2,18,18,5], index: 0, kind: input, shape index: {}]   ;;  %s4399_s1 = inlined_call_operand.vmem [shape: f32[2,18,18], index: 1, kind: input, shape index: {}]   ;;  %s4400_s2 = inlined_call_operand.vmem [shape: bf16[45,9], index: 2, kind: input, shape index: {}]   ;;  %s4401_s3 = inlined_call_operand.vmem [shape: f32[1,8], index: 3, kind: input, shape index: {}]   ;;  %s4402_s4 = inlined_call_operand.hbm [shape: f32[2,8,256], index: 4, kind: output, shape index: {0}]   ;;  %s4403_s5 = inlined_call_operand.hbm [shape: f32[2,16,16], index: 5, kind: output, shape index: {1}]  }
   0x1   :  { %13 = vsyncpa [#allocation4 + $0x1], 0 }
   0x2   :  { %14 = vsyncpa [#allocation6], 0 }
   0x3   :  { %16 = vsyncpa [#allocation6 + $0x1], 0  ;;  %s2998_s18 = smov 0   ;;  %s3000_s19 = smov 0  }
   0x4   :  { %s3002_s20 = smov 0   ;;  %s3004_s21 = smov 0  }
   0x5 LB: > { %s3019_s22 = sadd.s32 4294967295, %s2950_s21   ;;  %s2539_s23 = sadd.s32 4294967294, %s2950_s21   ;;  %s2950_s21 = sphi %s3004_s21, %s4483_s21   ;;  %s2946_s20 = sphi %s3002_s20, %s4482_s20   ;;  %s2942_s19 = sphi %s3000_s19, %s4481_s19   ;;  %s2938_s18 = sphi %s2998_s18, %s4480_s18  }
   0x6   : > { %s3023_s24 = sadd.s32 1, %s2950_s21   ;;  %s123_s25 = sadd.s32 1, %s2946_s20 }
   0x7   : > { %s120_s26 = ssub.s32 %s2950_s21, %s3023_s24  ;;  %p133_p0 = scmp.ne.s32.totalorder %s2946_s20, %s2942_s19 }
   0x8   : > { %p121_p1 = scmp.eq.s32.totalorder %s120_s26, 0  ;;  %p134_p2 = scmp.eq.s32.totalorder %s3019_s22, 1 }
   0x9   : > { %p139_p3 = scmp.ne.s32.totalorder %s2942_s19, %s2938_s18  ;;  %p140_p4 = scmp.eq.s32.totalorder %s2539_s23, 1 }
   0xa   : > { %s3034_s27 = scalar_select %p121_p1, %s2946_s20, %s123_s25  }
   0xb   : > { %p3036_p5 = por %p134_p2, %p133_p0  ;;  %p3040_p6 = por %p140_p4, %p139_p3 }
   0xc   : > { %p2542_p7 = scmp.ge.s32.totalorder %s2950_s21, 1  ;;  %p206_p8 = scmp.lt.s32.totalorder %s2950_s21, 3 }
   0xe   : > { %p207_p9 = pnand %p2542_p7, %p206_p8 }
  0x10   : > { %210 = sbr.rel (%p207_p9) target bundleno = 924 (0x39c), region = 36 }
  0x17   : > { %p244_p10 = scmp.lt.s32.totalorder %s3019_s22, 1  ;;  %vm427_vm0 = vsmask.f32 3328  ;;  %vm428_vm1 = vsmask.f32 7440  ;;  %s2952_s10 = smov 5  }
  0x18   : > { %vm3092_vm2 = vmor %vm427_vm0, %vm428_vm1  ;;  %vm953_vm3 = vcmask 1042432   ;;  %vm954_vm4 = vcmask 1046532   ;;  %s2953_s15 = smov 127   ;;  %s2954_s16 = smov 10   ;;  %vm408_vm6 = vcmask 39936   ;;  %vm910_vm7 = vcmask 80936  }
  0x19   : > { %s3048_s30 = scalar_select %p244_p10, %s3019_s22, 1  ;;  %vm3393_vm5 = vmor %vm953_vm3, %vm954_vm4  ;;  %vm1524_vm8 = vcmask 1045504   ;;  %vm1260_vm9 = vcmask 1046528   ;;  %vm1164_vm10 = vcmask 121936   ;;  %vm1242_vm11 = vcmask 162936  }
  0x1a   : > { %s2955_s17 = smov 15   ;;  %s2956_s23 = smov 20   ;;  %vm1345_vm12 = vcmask 203936   ;;  %vm1429_vm13 = vcmask 244936   ;;  %vm1507_vm14 = vcmask 285936   ;;  %vm1609_vm15 = vcmask 326936  }
  0x1b   : > { %s2712_s6 = smul.u32 216, %s3048_s30  ;;  %s2957_s25 = smov 25   ;;  %vm1693_vm0 = vcmask 367936   ;;  %vm1757_vm1 = vcmask 367616  }
  0x1c   : > { %s2713_s11 = smul.u32 24, %s3048_s30  ;;  %s2958_s26 = smov 30  }
  0x1d   : > { %s3054_s9 = scalar_lea.vmem %s4398_s0, %s2712_s6  ;;  %s2959_s7 = smov 35  }
  0x1e   : > { %v3057_v0 = vld [vmem:[%s3054_s9 + $0x18] sm:$0xf]  ;;  %v3060_v1 = vld [vmem:[%s3054_s9 + $0x1c] sm:$0xf]  ;;  %v3063_v2 = vld [vmem:[%s3054_s9 + $0x20] sm:$0x1]  ;;  %s3414_s14 = scalar_lea.vmem %s4399_s1, %s2713_s11 }
  0x1f   : > { %v479_v3 = vshrl.u32 %v3057_v0, 16  ;;  %v482_v4 = vshll.u32 %v3057_v0, 16  ;;  %v488_v5 = vshll.u32 %v3060_v1, 16  ;;  %v492_v6 = vshrl.u32 %v3060_v1, 16  ;;  %v3070_v7 = vld [vmem:[%s3054_s9] sm:$0xf] }
  0x20   : > { %v498_v8 = vshll.u32 %v3063_v2, 16  ;;  %v3074_v9 = vld [vmem:[%s3054_s9 + $0x4] sm:$0xf]  ;;  %v3077_v10 = vld [vmem:[%s3054_s9 + $0x8] sm:$0x1]  ;;  %v431_v11 = vshrl.u32 %v3070_v7, 16 }
  0x21   : > { %v481_v12 = vrot.slane %v479_v3, 4  ;;  %v484_v13 = vrot.slane %v482_v4, 5  ;;  %v490_v14 = vrot.slane %v488_v5, 5  ;;  %v494_v15 = vrot.slane %v492_v6, 4  ;;  %v3081_v16 = vld [vmem:[%s3054_s9 + $0x24] sm:$0xf] }
  0x22   : > { %v500_v17 = vrot.slane %v498_v8, 5  ;;  %v433_v18 = vrot.slane %v431_v11, 4  ;;  %v434_v19 = vshll.u32 %v3070_v7, 16  ;;  %v440_v20 = vshll.u32 %v3074_v9, 16  ;;  %v3088_v25 = vld [vmem:[%s3054_s9 + $0x28] sm:$0xf] }
  0x23   : > { %v485_v21 = vor.u32 %v484_v13, %v481_v12  ;;  %v495_v22 = vor.u32 %v494_v15, %v490_v14  ;;  %v444_v23 = vshrl.u32 %v3074_v9, 16  ;;  %v450_v24 = vshll.u32 %v3077_v10, 16  ;;  %v3099_v35 = vld [vmem:[%s3054_s9 + $0x2c] sm:$0x1]  ;;  %v3111_v45 = vld [vmem:[%s3054_s9 + $0x10] sm:$0xf] }
  0x24   : > { %v436_v27 = vrot.slane %v434_v19, 5  ;;  %v442_v28 = vrot.slane %v440_v20, 5  ;;  %v503_v29 = vshrl.u32 %v3081_v16, 16  ;;  %v506_v30 = vshll.u32 %v3081_v16, 16  ;;  %v3103_v40 = vld [vmem:[%s3054_s9 + $0xc] sm:$0xf] }
  0x25   : > { %v486_v31 = vrot.slane %v485_v21, 4  ;;  %v496_v32 = vrot.slane %v495_v22, 4  ;;  %v446_v33 = vrot.slane %v444_v23, 4  ;;  %v452_v34 = vrot.slane %v450_v24, 5  ;;  %v3117_v53 = vld [vmem:[%s3054_s9 + $0x14] sm:$0x1] }
  0x26   : > { %v437_v36 = vor.u32 %v436_v27, %v433_v18  ;;  %v505_v37 = vrot.slane %v503_v29, 4  ;;  %v508_v38 = vrot.slane %v506_v30, 5  ;;  %v512_v39 = vshll.u32 %v3088_v25, 16  ;;  %v3127_v59 = vld [vmem:[%s3054_s9 + $0x3c] sm:$0xf]  ;;  %s2961_s13 = smov 40  }
  0x27   : > { %v491_v41 = vsel %vm3092_vm2, %v486_v31, %v490_v14  ;;  %v501_v42 = vsel %vm3092_vm2, %v496_v32, %v500_v17  ;;  %v447_v43 = vor.u32 %v446_v33, %v442_v28  ;;  %v516_v44 = vshrl.u32 %v3088_v25, 16  ;;  %v3132_v3 = vld [vmem:[%s3054_s9 + $0x40] sm:$0xf]  ;;  %v3139_v14 = vld [vmem:[%s3054_s9 + $0x44] sm:$0x1]  ;;  %s2964_s11 = smov [#allocation5]  }
  0x28   : > { %v3113_v46 = vcombine.low %v491_v41, %v501_v42  ;;  %v438_v47 = vrot.slane %v437_v36, 4  ;;  %v509_v48 = vor.u32 %v508_v38, %v505_v37  ;;  %v514_v49 = vrot.slane %v512_v39, 5  ;;  %v3147_v21 = vld [vmem:[%s3054_s9 + $0x30] sm:$0xf]  ;;  %v3163_v41 = vld [vmem:[%s3054_s9 + $0x38] sm:$0x1] }
  0x29   : > { %v448_v50 = vrot.slane %v447_v43, 4  ;;  %v518_v51 = vrot.slane %v516_v44, 4  ;;  %v522_v52 = vshll.u32 %v3099_v35, 16  ;;  %v455_v54 = vshrl.u32 %v3103_v40, 16  ;;  %v3168_v44 = vld [vmem:[%s3054_s9 + $0x54] sm:$0xf] }
  0x2a   : > { %4440 = vst [vmem:[#allocation9_spill] sm:$0xff] %v3113_v46  ;;  %866 = vrot.lane.b32.xlu1 %v3113_v46, %s2952_s10  ;;  %v443_v55 = vsel %vm3092_vm2, %v438_v47, %v442_v28  ;;  %v510_v56 = vrot.slane %v509_v48, 4  ;;  %v458_v57 = vshll.u32 %v3103_v40, 16  ;;  %v464_v58 = vshll.u32 %v3111_v45, 16  ;;  %v3152_v28 = vld [vmem:[%s3054_s9 + $0x34] sm:$0xf] }
  0x2b   : > { %v453_v60 = vsel %vm3092_vm2, %v448_v50, %v452_v34  ;;  %v519_v61 = vor.u32 %v518_v51, %v514_v49  ;;  %v524_v62 = vrot.slane %v522_v52, 5  ;;  %v457_v63 = vrot.slane %v455_v54, 4  ;;  %s2860_s12 = sshll.u32 %s2964_s11, 4  ;;  %s2861_s12 = int_to_ptr.vmem [resolvable:$false] %s2860_s12 }
  0x2c   : > { %v2563_v4 = vcombine.low %v443_v55, %v453_v60  ;;  %v515_v5 = vsel %vm3092_vm2, %v510_v56, %v514_v49  ;;  %v460_v6 = vrot.slane %v458_v57, 5  ;;  %v466_v8 = vrot.slane %v464_v58, 5  ;;  %v3175_v60 = vld [vmem:[%s3054_s9 + $0x58] sm:$0xf] }
  0x2d   : > { %v520_v11 = vrot.slane %v519_v61, 4  ;;  %v468_v12 = vshrl.u32 %v3111_v45, 16  ;;  %v474_v13 = vshll.u32 %v3117_v53, 16  ;;  %v551_v15 = vshrl.u32 %v3127_v59, 16 }
  0x2e   : > { %862 = vrot.lane.b32.xlu0 %v2563_v4, %s2952_s10  ;;  %v461_v17 = vor.u32 %v460_v6, %v457_v63  ;;  %v554_v18 = vshll.u32 %v3127_v59, 16  ;;  %v560_v19 = vshll.u32 %v3132_v3, 16  ;;  %v564_v20 = vshrl.u32 %v3132_v3, 16  ;;  %v278_v6 = vld [vmem:[%s3054_s9 + $0x5c] sm:$0x1] }
  0x2f   : > { %v525_v22 = vsel %vm3092_vm2, %v520_v11, %v524_v62  ;;  %v470_v23 = vrot.slane %v468_v12, 4  ;;  %v476_v24 = vrot.slane %v474_v13, 5  ;;  %v553_v27 = vrot.slane %v551_v15, 4  ;;  %v3187_v15 = vld [vmem:[%s3054_s9 + $0x48] sm:$0xf] }
  0x30   : > { %v3154_v29 = vcombine.low %v515_v5, %v525_v22  ;;  %v462_v30 = vrot.slane %v461_v17, 4  ;;  %v556_v31 = vrot.slane %v554_v18, 5  ;;  %v562_v32 = vrot.slane %v560_v19, 5 }
  0x31   : > { %v471_v33 = vor.u32 %v470_v23, %v466_v8  ;;  %v566_v34 = vrot.slane %v564_v20, 4  ;;  %v570_v36 = vshll.u32 %v3139_v14, 16  ;;  %v527_v37 = vshrl.u32 %v3147_v21, 16 }
  0x32   : > { %4441 = vst [vmem:[#allocation10_spill] sm:$0xff] %v3154_v29  ;;  %868 = vrot.lane.b32.xlu1 %v3154_v29, %s2952_s10  ;;  %v467_v38 = vsel %vm3092_vm2, %v462_v30, %v466_v8  ;;  %v557_v39 = vor.u32 %v556_v31, %v553_v27  ;;  %v530_v42 = vshll.u32 %v3147_v21, 16  ;;  %v536_v43 = vshll.u32 %v3152_v28, 16  ;;  %v3196_v27 = vld [vmem:[%s3054_s9 + $0x4c] sm:$0xf] }
  0x33   : > { %v472_v47 = vrot.slane %v471_v33, 4  ;;  %v567_v48 = vor.u32 %v566_v34, %v562_v32  ;;  %v572_v49 = vrot.slane %v570_v36, 5  ;;  %v529_v50 = vrot.slane %v527_v37, 4  ;;  %v3203_v33 = vld [vmem:[%s3054_s9 + $0x50] sm:$0x1] }
  0x34   : > { %v558_v51 = vrot.slane %v557_v39, 4  ;;  %v532_v52 = vrot.slane %v530_v42, 5  ;;  %v538_v54 = vrot.slane %v536_v43, 5  ;;  %v540_v55 = vshrl.u32 %v3152_v28, 16  ;;  %4444 = vst [vmem:[#allocation13_spill] sm:$0xff] %v3203_v33 }
  0x35   : > { %v477_v56 = vsel %vm3092_vm2, %v472_v47, %v476_v24  ;;  %v568_v57 = vrot.slane %v567_v48, 4  ;;  %v546_v58 = vshll.u32 %v3163_v41, 16  ;;  %v599_v61 = vshrl.u32 %v3168_v44, 16  ;;  %v3208_v42 = vld [vmem:[%s3054_s9 + $0x6c] sm:$0xf] }
  0x36   : > { %v3178_v62 = vcombine.low %v467_v38, %v477_v56  ;;  %v563_v63 = vsel %vm3092_vm2, %v558_v51, %v562_v32  ;;  %v533_v4 = vor.u32 %v532_v52, %v529_v50  ;;  %v542_v5 = vrot.slane %v540_v55, 4  ;;  %v3217_v55 = vld [vmem:[%s3054_s9 + $0x70] sm:$0xf] }
  0x37   : > { %v573_v8 = vsel %vm3092_vm2, %v568_v57, %v572_v49  ;;  %v548_v11 = vrot.slane %v546_v58, 5  ;;  %v601_v12 = vrot.slane %v599_v61, 4  ;;  %v602_v13 = vshll.u32 %v3168_v44, 16 }
  0x38   : > { %4442 = vst [vmem:[#allocation11_spill] sm:$0xff] %v3178_v62  ;;  %864 = vrot.lane.b32.xlu0 %v3178_v62, %s2952_s10  ;;  %v3191_v17 = vcombine.low %v563_v63, %v573_v8  ;;  %v534_v18 = vrot.slane %v533_v4, 4  ;;  %v543_v19 = vor.u32 %v542_v5, %v538_v54  ;;  %v608_v20 = vshll.u32 %v3175_v60, 16 }
  0x39   : > { %v604_v22 = vrot.slane %v602_v13, 5  ;;  %v612_v23 = vshrl.u32 %v3175_v60, 16  ;;  %v618_v24 = vshll.u32 %v278_v6, 16  ;;  %v575_v34 = vshrl.u32 %v3187_v15, 16  ;;  %v3226_v6 = vld [vmem:[%s3054_s9 + $0x74] sm:$0x1] }
  0x3a   : > { %4443 = vst [vmem:[#allocation12_spill] sm:$0xff] %v3191_v17  ;;  %872 = vrot.lane.b32.xlu1 %v3191_v17, %s2952_s10  ;;  %v539_v30 = vsel %vm3092_vm2, %v534_v18, %v538_v54  ;;  %v544_v31 = vrot.slane %v543_v19, 4  ;;  %v610_v32 = vrot.slane %v608_v20, 5  ;;  %v578_v39 = vshll.u32 %v3187_v15, 16  ;;  %v3231_v19 = vld [vmem:[%s3054_s9 + $0x60] sm:$0xf] }
  0x3b   : > { %v605_v36 = vor.u32 %v604_v22, %v601_v12  ;;  %v614_v37 = vrot.slane %v612_v23, 4  ;;  %v620_v38 = vrot.slane %v618_v24, 5  ;;  %v577_v47 = vrot.slane %v575_v34, 4 }
  0x3c   : > { %v549_v43 = vsel %vm3092_vm2, %v544_v31, %v548_v11  ;;  %v584_v48 = vshll.u32 %v3196_v27, 16  ;;  %v588_v49 = vshrl.u32 %v3196_v27, 16  ;;  %v580_v54 = vrot.slane %v578_v39, 5 }
  0x3d   : > { %v3214_v50 = vcombine.low %v539_v30, %v549_v43  ;;  %v606_v51 = vrot.slane %v605_v36, 4  ;;  %v615_v52 = vor.u32 %v614_v37, %v610_v32  ;;  %v594_v58 = vshll.u32 %v3203_v33, 16  ;;  %v3237_v30 = vld [vmem:[%s3054_s9 + $0x64] sm:$0xf] }
  0x3e   : > { %v586_v56 = vrot.slane %v584_v48, 5  ;;  %v590_v57 = vrot.slane %v588_v49, 4  ;;  %v647_v61 = vshrl.u32 %v3208_v42, 16  ;;  %v581_v5 = vor.u32 %v580_v54, %v577_v47  ;;  %v3255_v54 = vld [vmem:[%s3054_s9 + $0x84] sm:$0xf] }
  0x3f   : > { %4445 = vst [vmem:[#allocation14_spill] sm:$0xff] %v3214_v50  ;;  %870 = vrot.lane.b32.xlu0 %v3214_v50, %s2952_s10  ;;  %v611_v63 = vsel %vm3092_vm2, %v606_v51, %v610_v32  ;;  %v616_v4 = vrot.slane %v615_v52, 4  ;;  %v650_v8 = vshll.u32 %v3208_v42, 16  ;;  %v596_v12 = vrot.slane %v594_v58, 5  ;;  %v3311_v33 = vld [vmem:[%s3054_s9 + $0xa4] sm:$0x1] }
  0x40   : > { %v591_v11 = vor.u32 %v590_v57, %v586_v56  ;;  %v649_v13 = vrot.slane %v647_v61, 4  ;;  %v656_v18 = vshll.u32 %v3217_v55, 16  ;;  %v582_v22 = vrot.slane %v581_v5, 4  ;;  %4451 = vst [vmem:[#allocation20_spill] sm:$0xff] %v3311_v33 }
  0x41   : > { %v621_v20 = vsel %vm3092_vm2, %v616_v4, %v620_v38  ;;  %v652_v23 = vrot.slane %v650_v8, 5  ;;  %v660_v24 = vshrl.u32 %v3217_v55, 16  ;;  %v666_v36 = vshll.u32 %v3226_v6, 16  ;;  %v3245_v38 = vld [vmem:[%s3054_s9 + $0x68] sm:$0x1] }
  0x42   : > { %v3239_v31 = vcombine.low %v611_v63, %v621_v20  ;;  %v592_v32 = vrot.slane %v591_v11, 4  ;;  %v658_v34 = vrot.slane %v656_v18, 5  ;;  %v587_v37 = vsel %vm3092_vm2, %v582_v22, %v586_v56  ;;  %v3260_v63 = vld [vmem:[%s3054_s9 + $0x88] sm:$0xf]  ;;  %v3269_v18 = vld [vmem:[%s3054_s9 + $0x8c] sm:$0x1] }
  0x43   : > { %v653_v39 = vor.u32 %v652_v23, %v649_v13  ;;  %v662_v43 = vrot.slane %v660_v24, 4  ;;  %v623_v47 = vshrl.u32 %v3231_v19, 16  ;;  %v668_v49 = vrot.slane %v666_v36, 5 }
  0x44   : > { %4446 = vst [vmem:[#allocation15_spill] sm:$0xff] %v3239_v31  ;;  %876 = vrot.lane.b32.xlu1 %v3239_v31, %s2952_s10  ;;  %v597_v48 = vsel %vm3092_vm2, %v592_v32, %v596_v12  ;;  %v626_v51 = vshll.u32 %v3231_v19, 16  ;;  %v632_v52 = vshll.u32 %v3237_v30, 16  ;;  %v636_v8 = vshrl.u32 %v3237_v30, 16 }
  0x45   : > { %v3257_v56 = vcombine.low %v587_v37, %v597_v48  ;;  %v654_v57 = vrot.slane %v653_v39, 4  ;;  %v663_v58 = vor.u32 %v662_v43, %v658_v34  ;;  %v625_v61 = vrot.slane %v623_v47, 4  ;;  %v3275_v37 = vld [vmem:[%s3054_s9 + $0x78] sm:$0xf]  ;;  %v3281_v48 = vld [vmem:[%s3054_s9 + $0x7c] sm:$0xf] }
  0x46   : > { %v628_v4 = vrot.slane %v626_v51, 5  ;;  %v634_v5 = vrot.slane %v632_v52, 5  ;;  %v642_v11 = vshll.u32 %v3245_v38, 16  ;;  %v695_v20 = vshrl.u32 %v3255_v54, 16 }
  0x47   : > { %4447 = vst [vmem:[#allocation16_spill] sm:$0xff] %v3257_v56  ;;  %874 = vrot.lane.b32.xlu0 %v3257_v56, %s2952_s10  ;;  %v659_v12 = vsel %vm3092_vm2, %v654_v57, %v658_v34  ;;  %v664_v13 = vrot.slane %v663_v58, 4  ;;  %v698_v22 = vshll.u32 %v3255_v54, 16  ;;  %v638_v24 = vrot.slane %v636_v8, 4 }
  0x48   : > { %v629_v23 = vor.u32 %v628_v4, %v625_v61  ;;  %v644_v32 = vrot.slane %v642_v11, 5  ;;  %v704_v36 = vshll.u32 %v3260_v63, 16  ;;  %v697_v43 = vrot.slane %v695_v20, 4 }
  0x49   : > { %v669_v39 = vsel %vm3092_vm2, %v664_v13, %v668_v49  ;;  %v700_v34 = vrot.slane %v698_v22, 5  ;;  %v708_v47 = vshrl.u32 %v3260_v63, 16  ;;  %v639_v57 = vor.u32 %v638_v24, %v634_v5 }
  0x4a   : > { %v3283_v51 = vcombine.low %v659_v12, %v669_v39  ;;  %v630_v52 = vrot.slane %v629_v23, 4  ;;  %v706_v58 = vrot.slane %v704_v36, 5  ;;  %v714_v8 = vshll.u32 %v3269_v18, 16  ;;  %v3292_v12 = vld [vmem:[%s3054_s9 + $0x80] sm:$0x1] }
  0x4b   : > { %v701_v61 = vor.u32 %v700_v34, %v697_v43  ;;  %v710_v4 = vrot.slane %v708_v47, 4  ;;  %v671_v11 = vshrl.u32 %v3275_v37, 16  ;;  %v640_v13 = vrot.slane %v639_v57, 4  ;;  %4449 = vst [vmem:[#allocation18_spill] sm:$0xff] %v3292_v12  ;;  %v3297_v43 = vld [vmem:[%s3054_s9 + $0x9c] sm:$0xf] }
  0x4c   : > { %4448 = vst [vmem:[#allocation17_spill] sm:$0xff] %v3283_v51  ;;  %880 = vrot.lane.b32.xlu1 %v3283_v51, %s2952_s10  ;;  %v635_v49 = vsel %vm3092_vm2, %v630_v52, %v634_v5  ;;  %v674_v20 = vshll.u32 %v3275_v37, 16  ;;  %v680_v22 = vshll.u32 %v3281_v48, 16  ;;  %v716_v36 = vrot.slane %v714_v8, 5  ;;  %v3303_v52 = vld [vmem:[%s3054_s9 + $0xa0] sm:$0xf] }
  0x4d   : > { %v702_v23 = vrot.slane %v701_v61, 4  ;;  %v711_v24 = vor.u32 %v710_v4, %v706_v58  ;;  %v673_v39 = vrot.slane %v671_v11, 4  ;;  %v645_v34 = vsel %vm3092_vm2, %v640_v13, %v644_v32 }
  0x4e   : > { %v676_v47 = vrot.slane %v674_v20, 5  ;;  %v682_v31 = vrot.slane %v680_v22, 5  ;;  %v684_v5 = vshrl.u32 %v3281_v48, 16  ;;  %v3305_v57 = vcombine.low %v635_v49, %v645_v34 }
  0x4f   : > { %v707_v61 = vsel %vm3092_vm2, %v702_v23, %v706_v58  ;;  %v712_v4 = vrot.slane %v711_v24, 4  ;;  %v690_v8 = vshll.u32 %v3292_v12, 16  ;;  %v743_v32 = vshrl.u32 %v3297_v43, 16  ;;  %v3322_v23 = vld [vmem:[%s3054_s9 + $0x90] sm:$0xf] }
  0x50   : > { %4450 = vst [vmem:[#allocation19_spill] sm:$0xff] %v3305_v57  ;;  %v677_v11 = vor.u32 %v676_v47, %v673_v39  ;;  %v686_v56 = vrot.slane %v684_v5, 4  ;;  %v746_v13 = vshll.u32 %v3297_v43, 16  ;;  %878 = vrot.lane.b32.xlu0 %v3305_v57, %s2952_s10  ;;  %v752_v58 = vshll.u32 %v3303_v52, 16  ;;  %v3327_v5 = vld [vmem:[%s3054_s9 + $0x94] sm:$0xf] }
  0x51   : > { %v717_v49 = vsel %vm3092_vm2, %v712_v4, %v716_v36  ;;  %v692_v20 = vrot.slane %v690_v8, 5  ;;  %v756_v22 = vshrl.u32 %v3303_v52, 16  ;;  %v745_v47 = vrot.slane %v743_v32, 4 }
  0x52   : > { %v3324_v24 = vcombine.low %v707_v61, %v717_v49  ;;  %v678_v39 = vrot.slane %v677_v11, 4  ;;  %v687_v34 = vor.u32 %v686_v56, %v682_v31  ;;  %v748_v57 = vrot.slane %v746_v13, 5  ;;  %v3337_v13 = vld [vmem:[%s3054_s9 + $0x98] sm:$0x1] }
  0x53   : > { %v754_v17 = vrot.slane %v752_v58, 5  ;;  %v758_v50 = vrot.slane %v756_v22, 4  ;;  %v762_v36 = vshll.u32 %v3311_v33, 16  ;;  %v719_v8 = vshrl.u32 %v3322_v23, 16  ;;  %v3341_v22 = vld [vmem:[%s3054_s9 + $0xb4] sm:$0xf] }
  0x54   : > { %4452 = vst [vmem:[#allocation21_spill] sm:$0xff] %v3324_v24  ;;  %884 = vrot.lane.b32.xlu1 %v3324_v24, %s2952_s10  ;;  %v683_v61 = vsel %vm3092_vm2, %v678_v39, %v682_v31  ;;  %v688_v4 = vrot.slane %v687_v34, 4  ;;  %v722_v56 = vshll.u32 %v3322_v23, 16  ;;  %v749_v11 = vor.u32 %v748_v57, %v745_v47  ;;  %4453 = vst [vmem:[#allocation22_spill] sm:$0xff] %v3341_v22  ;;  %v3347_v24 = vld [vmem:[%s3054_s9 + $0xb8] sm:$0xf] }
  0x55   : > { %v759_v32 = vor.u32 %v758_v50, %v754_v17  ;;  %v764_v49 = vrot.slane %v762_v36, 5  ;;  %v728_v58 = vshll.u32 %v3327_v5, 16  ;;  %v721_v31 = vrot.slane %v719_v8, 4 }
  0x56   : > { %v693_v29 = vsel %vm3092_vm2, %v688_v4, %v692_v20  ;;  %v724_v39 = vrot.slane %v722_v56, 5  ;;  %v732_v34 = vshrl.u32 %v3327_v5, 16  ;;  %v750_v50 = vrot.slane %v749_v11, 4 }
  0x57   : > { %v3349_v57 = vcombine.low %v683_v61, %v693_v29  ;;  %v760_v47 = vrot.slane %v759_v32, 4  ;;  %v730_v36 = vrot.slane %v728_v58, 5  ;;  %v738_v12 = vshll.u32 %v3337_v13, 16  ;;  %v3360_v61 = vld [vmem:[%s3054_s9 + $0xbc] sm:$0x1] }
  0x58   : > { %v725_v46 = vor.u32 %v724_v39, %v721_v31  ;;  %v734_v62 = vrot.slane %v732_v34, 4  ;;  %v791_v51 = vshrl.u32 %v3341_v22, 16  ;;  %v755_v20 = vsel %vm3092_vm2, %v750_v50, %v754_v17  ;;  %4455 = vst [vmem:[#allocation24_spill] sm:$0xff] %v3360_v61  ;;  %v3367_v31 = vld [vmem:[%s3054_s9 + $0xa8] sm:$0xf] }
  0x59   : > { %4454 = vst [vmem:[#allocation23_spill] sm:$0xff] %v3349_v57  ;;  %882 = vrot.lane.b32.xlu0 %v3349_v57, %s2952_s10  ;;  %v765_v29 = vsel %vm3092_vm2, %v760_v47, %v764_v49  ;;  %v794_v4 = vshll.u32 %v3341_v22, 16  ;;  %v800_v8 = vshll.u32 %v3347_v24, 16  ;;  %v740_v58 = vrot.slane %v738_v12, 5  ;;  %v3371_v49 = vld [vmem:[%s3054_s9 + $0xac] sm:$0xf] }
  0x5a   : > { %v3364_v56 = vcombine.low %v755_v20, %v765_v29  ;;  %v726_v11 = vrot.slane %v725_v46, 4  ;;  %v735_v32 = vor.u32 %v734_v62, %v730_v36  ;;  %v793_v39 = vrot.slane %v791_v51, 4  ;;  %v3379_v51 = vld [vmem:[%s3054_s9 + $0xb0] sm:$0x1] }
  0x5b   : > { %v796_v34 = vrot.slane %v794_v4, 5  ;;  %v802_v17 = vrot.slane %v800_v8, 5  ;;  %v804_v50 = vshrl.u32 %v3347_v24, 16  ;;  %v810_v46 = vshll.u32 %v3360_v61, 16  ;;  %4457 = vst [vmem:[#allocation26_spill] sm:$0xff] %v3379_v51 }
  0x5c   : > { %4456 = vst [vmem:[#allocation25_spill] sm:$0xff] %v3364_v56  ;;  %888 = vrot.lane.b32.xlu1 %v3364_v56, %s2952_s10  ;;  %v731_v47 = vsel %vm3092_vm2, %v726_v11, %v730_v36  ;;  %v736_v20 = vrot.slane %v735_v32, 4  ;;  %v767_v29 = vshrl.u32 %v3367_v31, 16  ;;  %v770_v4 = vshll.u32 %v3367_v31, 16 }
  0x5d   : > { %v797_v62 = vor.u32 %v796_v34, %v793_v39  ;;  %v806_v12 = vrot.slane %v804_v50, 4  ;;  %v812_v56 = vrot.slane %v810_v46, 5  ;;  %v776_v57 = vshll.u32 %v3371_v49, 16 }
  0x5e   : > { %v741_v8 = vsel %vm3092_vm2, %v736_v20, %v740_v58  ;;  %v780_v36 = vshrl.u32 %v3371_v49, 16  ;;  %v769_v34 = vrot.slane %v767_v29, 4  ;;  %v772_v50 = vrot.slane %v770_v4, 5 }
  0x5f   : > { %v3387_v11 = vcombine.low %v731_v47, %v741_v8  ;;  %v798_v32 = vrot.slane %v797_v62, 4  ;;  %v807_v39 = vor.u32 %v806_v12, %v802_v17  ;;  %v778_v61 = vrot.slane %v776_v57, 5 }
  0x60   : > { %v782_v33 = vrot.slane %v780_v36, 4  ;;  %v786_v22 = vshll.u32 %v3379_v51, 16  ;;  %v2580_v46 = vrot.slane %v3103_v40, 9  ;;  %v965_v57 = vrot.slane %v3111_v45, 5 }
  0x61   : > { %4458 = vst [vmem:[#allocation27_spill] sm:$0xff] %v3387_v11  ;;  %886 = vrot.lane.b32.xlu0 %v3387_v11, %s2952_s10  ;;  %v803_v47 = vsel %vm3092_vm2, %v798_v32, %v802_v17  ;;  %v808_v20 = vrot.slane %v807_v39, 4  ;;  %v773_v62 = vor.u32 %v772_v50, %v769_v34  ;;  %v968_v4 = vrot.slane %v3117_v53, 5 }
  0x62   : > { %v783_v12 = vor.u32 %v782_v33, %v778_v61  ;;  %v788_v29 = vrot.slane %v786_v22, 5  ;;  %v966_v36 = vsel %vm3393_vm5, %v2580_v46, %v965_v57  ;;  %v967_v11 = vrot.slane %v965_v57, 4  ;;  %v3431_v46 = vld [vmem:[%s3414_s14 + $0x8] sm:$0xff] }
  0x63   : > { %v813_v8 = vsel %vm3092_vm2, %v808_v20, %v812_v56  ;;  %v2579_v51 = vrot.slane %v3070_v7, 9  ;;  %v774_v32 = vrot.slane %v773_v62, 4  ;;  %v958_v53 = vrot.slane %v3074_v9, 5 }
  0x64   : > { %v3409_v17 = vcombine.low %v803_v47, %v813_v8  ;;  %v784_v39 = vrot.slane %v783_v12, 4  ;;  %v969_v33 = vsel %vm3393_vm5, %v967_v11, %v968_v4  ;;  %v961_v22 = vrot.slane %v3077_v10, 5 }
  0x65   : > { %v2582_v56 = vrot.slane %v3081_v16, 9  ;;  %v979_v34 = vrot.slane %v3088_v25, 5  ;;  %v779_v50 = vsel %vm3092_vm2, %v774_v32, %v778_v61  ;;  %v3433_v11 = vcombine.low %v966_v36, %v969_v33 }
  0x66   : > { %892 = vrot.lane.b32.xlu1 %v3409_v17, %s2952_s10  ;;  %v789_v47 = vsel %vm3092_vm2, %v784_v39, %v788_v29  ;;  %v960_v10 = vrot.slane %v958_v53, 4  ;;  %v959_v62 = vsel %vm3393_vm5, %v2579_v51, %v958_v53  ;;  %v982_v61 = vrot.slane %v3099_v35, 5  ;;  %v3451_v51 = vld [vmem:[%s3414_s14] sm:$0xff] }
  0x67   : > { %v3428_v20 = vcombine.low %v779_v50, %v789_v47  ;;  %v981_v57 = vrot.slane %v979_v34, 4  ;;  %v980_v12 = vsel %vm3393_vm5, %v2582_v56, %v979_v34  ;;  %v972_v4 = vrot.slane %v3060_v1, 5 }
  0x68   : > { %v962_v29 = vsel %vm3393_vm5, %v960_v10, %v961_v22  ;;  %v2581_v8 = vrot.slane %v3057_v0, 9  ;;  %v2584_v36 = vrot.slane %v3127_v59, 9  ;;  %v993_v32 = vrot.slane %v3132_v3, 5 }
  0x69   : > { %890 = vrot.lane.b32.xlu0 %v3428_v20, %s2952_s10  ;;  %v983_v35 = vsel %vm3393_vm5, %v981_v57, %v982_v61  ;;  %v974_v39 = vrot.slane %v972_v4, 4  ;;  %v975_v53 = vrot.slane %v3063_v2, 5  ;;  %v996_v33 = vrot.slane %v3139_v14, 5 }
  0x6a   : > { %931 = vrot.lane.b32.xlu1 %v3431_v46, %s2953_s15  ;;  %v995_v22 = vrot.slane %v993_v32, 4  ;;  %v2595_v56 = vcombine.low %v959_v62, %v962_v29  ;;  %v2583_v34 = vrot.slane %v3147_v21, 9  ;;  %v986_v50 = vrot.slane %v3152_v28, 5 }
  0x6b   : > { %v989_v47 = vrot.slane %v3163_v41, 5  ;;  %v3462_v10 = vcombine.low %v980_v12, %v983_v35  ;;  %v973_v57 = vsel %vm3393_vm5, %v2581_v8, %v972_v4  ;;  %v994_v2 = vsel %vm3393_vm5, %v2584_v36, %v993_v32 }
  0x6c   : > { %v1021_v14 = vrot.slane %v3217_v55, 5  ;;  %v976_v41 = vsel %vm3393_vm5, %v974_v39, %v975_v53  ;;  %v997_v62 = vsel %vm3393_vm5, %v995_v22, %v996_v33  ;;  %v988_v12 = vrot.slane %v986_v50, 4 }
  0x6d   : > { %929 = vrot.lane.b32.xlu0 %v3451_v51, %s2953_s15  ;;  %v2588_v61 = vrot.slane %v3208_v42, 9  ;;  %v1024_v4 = vrot.slane %v3226_v6, 5  ;;  %v2587_v8 = vrot.slane %v3231_v19, 9  ;;  %v1014_v36 = vrot.slane %v3237_v30, 5 }
  0x6e   : > { %1118 = vrot.lane.b32.xlu1 %v3433_v11, %s2954_s16  ;;  %v1023_v29 = vrot.slane %v1021_v14, 4  ;;  %v987_v32 = vsel %vm3393_vm5, %v2583_v34, %v986_v50  ;;  %v990_v35 = vsel %vm3393_vm5, %v988_v12, %v989_v47  ;;  %v1017_v39 = vrot.slane %v3245_v38, 5 }
  0x6f   : > { %v3485_v53 = vcombine.low %v973_v57, %v976_v41  ;;  %v3487_v33 = vcombine.low %v994_v2, %v997_v62  ;;  %v1016_v22 = vrot.slane %v1014_v36, 4  ;;  %v3491_v6 = vcombine.low %v3057_v0, %v3060_v1 }
  0x70   : > { %v1022_v34 = vsel %vm3393_vm5, %v2588_v61, %v1021_v14  ;;  %v3499_v38 = vcombine.low %v3208_v42, %v3217_v55  ;;  %v3507_v50 = vcombine.low %v3275_v37, %v3281_v48  ;;  %v3509_v0 = vcombine.low %v987_v32, %v990_v35 }
  0x71   : > { %1116 = vrot.lane.b32.xlu0 %v2595_v56, %s2954_s16  ;;  %v3503_v56 = vcombine.low %v3103_v40, %v3111_v45  ;;  %v1025_v1 = vsel %vm3393_vm5, %v1023_v29, %v1024_v4  ;;  %v1015_v47 = vsel %vm3393_vm5, %v2587_v8, %v1014_v36  ;;  %v2590_v57 = vrot.slane %v3255_v54, 9  ;;  %411 = vst.msk [vmem:[#allocation2 + $0x10] sm:$0xff] %vm408_vm6, %v3491_v6  ;;  %v4462_v8 = vld [vmem:[#allocation20_spill] sm:$0xff] }
  0x72   : > { %1122 = vrot.lane.b32.xlu1 %v3462_v10, %s2954_s16  ;;  %v1018_v42 = vsel %vm3393_vm5, %v1016_v22, %v1017_v39  ;;  %v3520_v40 = vcombine.low %v3255_v54, %v3260_v63  ;;  %v3524_v45 = vcombine.low %v3081_v16, %v3088_v25  ;;  %v1035_v55 = vrot.slane %v3260_v63, 5  ;;  %418 = vst.msk [vmem:[#allocation2 + $0x48] sm:$0xff] %vm408_vm6, %v3499_v38  ;;  %v4463_v22 = vld [vmem:[#allocation26_spill] sm:$0xff] }
  0x73   : > { %v1038_v2 = vrot.slane %v3269_v18, 5  ;;  %v3532_v14 = vcombine.low %v3322_v23, %v3327_v5  ;;  %v3536_v41 = vcombine.low %v3147_v21, %v3152_v28  ;;  %v3540_v16 = vcombine.low %v1022_v34, %v1025_v1  ;;  %410 = vst.msk [vmem:[#allocation2 + $0x8] sm:$0xff] %vm408_vm6, %v3503_v56  ;;  %419 = vst.msk [vmem:[#allocation2 + $0x50] sm:$0xff] %vm408_vm6, %v3507_v50 }
  0x74   : > { %v1036_v25 = vsel %vm3393_vm5, %v2590_v57, %v1035_v55  ;;  %v1037_v54 = vrot.slane %v1035_v55, 4  ;;  %412 = vst.msk [vmem:[#allocation2 + $0x18] sm:$0xff] %vm408_vm6, %v3524_v45  ;;  %420 = vst.msk [vmem:[#allocation2 + $0x58] sm:$0xff] %vm408_vm6, %v3520_v40  ;;  %v3556_v21 = vcombine.low %v1015_v47, %v1018_v42  ;;  %v2547_v28 = vcombine.low %v3070_v7, %v3074_v9 }
  0x75   : > { %1120 = vrot.lane.b32.xlu0 %v3485_v53, %s2954_s16  ;;  %413 = vst.msk [vmem:[#allocation2 + $0x20] sm:$0xff] %vm408_vm6, %v3536_v41  ;;  %421 = vst.msk [vmem:[#allocation2 + $0x60] sm:$0xff] %vm408_vm6, %v3532_v14  ;;  %v3566_v63 = vcombine.low %v3127_v59, %v3132_v3  ;;  %v2591_v18 = vrot.slane %v3322_v23, 9  ;;  %v1042_v12 = vrot.slane %v3327_v5, 5  ;;  %v1045_v61 = vrot.slane %v3337_v13, 5  ;;  %v4461_v23 = vld [vmem:[#allocation22_spill] sm:$0xff] }
  0x76   : > { %1126 = vrot.lane.b32.xlu1 %v3487_v33, %s2954_s16  ;;  %v1039_v62 = vsel %vm3393_vm5, %v1037_v54, %v1038_v2  ;;  %v3575_v29 = vcombine.low %v3168_v44, %v3175_v60  ;;  %409 = vst.msk [vmem:[#allocation2] sm:$0xff] %vm408_vm6, %v2547_v28  ;;  %v3586_v9 = vcombine.low %v3187_v15, %v3196_v27  ;;  %v1049_v13 = vrot.slane %v3303_v52, 5  ;;  %v4464_v2 = vld [vmem:[#allocation17_spill] sm:$0xff]  ;;  %v4465_v54 = vld [vmem:[#allocation18_spill] sm:$0xff] }
  0x77   : > { %v3579_v7 = vcombine.low %v1036_v25, %v1039_v62  ;;  %414 = vst.msk [vmem:[#allocation2 + $0x28] sm:$0xff] %vm408_vm6, %v3566_v63  ;;  %v3590_v59 = vcombine.low %v3231_v19, %v3237_v30  ;;  %v3594_v3 = vcombine.low %v3297_v43, %v3303_v52  ;;  %v1043_v44 = vsel %vm3393_vm5, %v2591_v18, %v1042_v12  ;;  %v4466_v18 = vld [vmem:[#allocation11_spill] sm:$0xff] }
  0x78   : > { %v1044_v60 = vrot.slane %v1042_v12, 4  ;;  %416 = vst.msk [vmem:[#allocation2 + $0x38] sm:$0xff] %vm408_vm6, %v3575_v29  ;;  %v3604_v5 = vcombine.low %v4461_v23, %v3347_v24  ;;  %v3608_v19 = vcombine.low %v3367_v31, %v3371_v49  ;;  %415 = vst.msk [vmem:[#allocation2 + $0x30] sm:$0xff] %vm408_vm6, %v3586_v9  ;;  %v2592_v30 = vrot.slane %v3297_v43, 9  ;;  %v4467_v62 = vld [vmem:[#allocation23_spill] sm:$0xff] }
  0x79   : > { %1124 = vrot.lane.b32.xlu0 %v3509_v0, %s2954_s16  ;;  %417 = vst.msk [vmem:[#allocation2 + $0x40] sm:$0xff] %vm408_vm6, %v3590_v59  ;;  %422 = vst.msk [vmem:[#allocation2 + $0x68] sm:$0xff] %vm408_vm6, %v3594_v3  ;;  %v1052_v36 = vrot.slane %v4462_v8, 5  ;;  %v1051_v52 = vrot.slane %v1049_v13, 4  ;;  %v2593_v35 = vrot.slane %v3367_v31, 9  ;;  %v1056_v39 = vrot.slane %v3371_v49, 5 }
  0x7a   : > { %1134 = vrot.lane.b32.xlu1 %v3540_v16, %s2954_s16  ;;  %v1046_v4 = vsel %vm3393_vm5, %v1044_v60, %v1045_v61  ;;  %424 = vst.msk [vmem:[#allocation2 + $0x78] sm:$0xff] %vm408_vm6, %v3604_v5  ;;  %423 = vst.msk [vmem:[#allocation2 + $0x70] sm:$0xff] %vm408_vm6, %v3608_v19  ;;  %v1050_v43 = vsel %vm3393_vm5, %v2592_v30, %v1049_v13  ;;  %v1059_v34 = vrot.slane %v4463_v22, 5  ;;  %v1028_v49 = vrot.slane %v3281_v48, 5  ;;  %v4468_v61 = vld [vmem:[#allocation9_spill] sm:$0xff] }
  0x7b   : > { %v3627_v32 = vcombine.low %v1043_v44, %v1046_v4  ;;  %v1053_v1 = vsel %vm3393_vm5, %v1051_v52, %v1052_v36  ;;  %v1057_v57 = vsel %vm3393_vm5, %v2593_v35, %v1056_v39  ;;  %v1058_v42 = vrot.slane %v1056_v39, 4  ;;  %v4469_v44 = vld [vmem:[#allocation24_spill] sm:$0xff]  ;;  %v4470_v22 = vld [vmem:[#allocation21_spill] sm:$0xff] }
  0x7c   : > { %v3638_v47 = vcombine.low %v1050_v43, %v1053_v1  ;;  %v2589_v25 = vrot.slane %v3275_v37, 9  ;;  %v1031_v28 = vrot.slane %v4465_v54, 5  ;;  %v1066_v37 = vrot.slane %v4469_v44, 5 }
  0x7d   : > { %1132 = vrot.lane.b32.xlu0 %v3556_v21, %s2954_s16  ;;  %v1060_v31 = vsel %vm3393_vm5, %v1058_v42, %v1059_v34  ;;  %v1063_v30 = vrot.slane %v3347_v24, 5  ;;  %v2594_v13 = vrot.slane %v4461_v23, 9  ;;  %v2782_v24 = vld [vmem:[%s4400_s2] sm:$0xff]   ;;  %v2784_v23 = vld [vmem:[%s4400_s2 + $0x10] sm:$0x7f]   ;;  %v2960_v52 = vmov 65535  }
  0x7e   : > { %1210 = vrot.lane.b32.xlu1 %v3499_v38, %s2955_s17  ;;  %v3649_v55 = vcombine.low %v1057_v57, %v1060_v31  ;;  %v1029_v48 = vsel %vm3393_vm5, %v2589_v25, %v1028_v49  ;;  %2668 = vmatprep.subr.bf16.mxu0 %v2782_v24  ;;  %v1806_v35 = vsel %vm1524_vm8, 4294967295, %v2960_v52  ;;  %v4471_v57 = vld [vmem:[#allocation10_spill] sm:$0xff] }
  0x7f   : > { %v1065_v4 = vrot.slane %v1063_v30, 4  ;;  %v1064_v8 = vsel %vm3393_vm5, %v2594_v13, %v1063_v30  ;;  %2706 = vmatprep.subr.bf16.mxu1 %v2782_v24  ;;  %2669 = vmatpush3.bf16.msra.mxu0 %v2782_v24  ;;  %v1807_v39 = vsel %vm1260_vm9, %v1806_v35, 0 }
  0x80   : > { %2709 = vmatpush3.bf16.msra.mxu1 %v2782_v24  ;;  %v1809_v34 = vand.u32 %v2784_v23, %v1807_v39  ;;  %v4476_v24 = vld [vmem:[#allocation13_spill] sm:$0xff] }
  0x81   : > { %1194 = vrot.lane.b32.xlu0 %v3503_v56, %s2955_s17  ;;  %v1030_v56 = vrot.slane %v1028_v49, 4  ;;  %v1067_v36 = vsel %vm3393_vm5, %v1065_v4, %v1066_v37 }
  0x82   : > { %1212 = vrot.lane.b32.xlu1 %v3507_v50, %s2955_s17  ;;  %v3679_v43 = vcombine.low %v1064_v8, %v1067_v36  ;;  %v2585_v8 = vrot.slane %v3187_v15, 9 }
  0x83   : > { %v1032_v12 = vsel %vm3393_vm5, %v1030_v56, %v1031_v28  ;;  %v4473_v56 = vld [vmem:[#allocation14_spill] sm:$0xff] }
  0x84   : > { %v2605_v60 = vcombine.low %v1029_v48, %v1032_v12 }
  0x85   : > { %1196 = vrot.lane.b32.xlu0 %v3491_v6, %s2955_s17 }
  0x86   : > { %1313 = vrot.lane.b32.xlu1 %v4464_v2, %s2956_s23 }
  0x89   : > { %1297 = vrot.lane.b32.xlu0 %v4466_v18, %s2956_s23 }
  0x8a   : > { %1315 = vrot.lane.b32.xlu1 %v4467_v62, %s2956_s23 }
  0x8d   : > { %1299 = vrot.lane.b32.xlu0 %v4468_v61, %s2956_s23 }
  0x8e   : > { %1397 = vrot.lane.b32.xlu1 %v3540_v16, %s2957_s25 }
  0x91   : > { %1381 = vrot.lane.b32.xlu0 %v3433_v11, %s2957_s25 }
  0x92   : > { %1399 = vrot.lane.b32.xlu1 %v2605_v60, %s2957_s25 }
  0x95   : > { %1383 = vrot.lane.b32.xlu0 %v3485_v53, %s2957_s25 }
  0x96   : > { %1475 = vrot.lane.b32.xlu1 %v3507_v50, %s2958_s26 }
  0x99   : > { %1459 = vrot.lane.b32.xlu0 %v3491_v6, %s2958_s26  ;;  %v2783_v6 = vld [vmem:[%s4400_s2 + $0x8] sm:$0xff]  }
  0x9a   : > { %1477 = vrot.lane.b32.xlu1 %v3520_v40, %s2958_s26  ;;  %2670 = vmatprep.subr.bf16.mxu0 %v2783_v6 }
  0x9b   : > { %2707 = vmatprep.subr.bf16.mxu1 %v2783_v6  ;;  %2671 = vmatpush3.bf16.msra.mxu0 %v2783_v6 }
  0x9c   : > { %v867_v11 = vpop.permute.xlu1 %866  ;;  %2710 = vmatpush3.bf16.msra.mxu1 %v2783_v6  ;;  %2672 = vmatprep.subr.bf16.mxu0 %v1809_v34 }
  0x9d   : > { %1461 = vrot.lane.b32.xlu0 %v3524_v45, %s2958_s26  ;;  %913 = vst.msk [vmem:[#allocation2 + $0x10] sm:$0xff] %vm910_vm7, %v867_v11  ;;  %2708 = vmatprep.subr.bf16.mxu1 %v1809_v34  ;;  %v1003_v11 = vrot.slane %v4476_v24, 5 }
  0x9e   : > { %1577 = vrot.lane.b32.xlu1 %v4467_v62, %s2959_s7  ;;  %v4475_v62 = vld [vmem:[#allocation12_spill] sm:$0xff] }
  0x9f   : > { %2673 = vmatpush3.bf16.msra.mxu0 %v1809_v34 }
  0xa0   : > { %v863_v50 = vpop.permute.xlu0 %862  ;;  %2711 = vmatpush3.bf16.msra.mxu1 %v1809_v34 }
  0xa1   : > { %1561 = vrot.lane.b32.xlu0 %v4468_v61, %s2959_s7  ;;  %911 = vst.msk [vmem:[#allocation2] sm:$0xff] %vm910_vm7, %v863_v50  ;;  %v4477_v50 = vld [vmem:[#allocation16_spill] sm:$0xff] }
  0xa2   : > { %1579 = vrot.lane.b32.xlu1 %v4470_v22, %s2959_s7 }
  0xa4   : > { %v869_v1 = vpop.permute.xlu1 %868 }
  0xa5   : > { %1563 = vrot.lane.b32.xlu0 %v4471_v57, %s2959_s7  ;;  %914 = vst.msk [vmem:[#allocation2 + $0x18] sm:$0xff] %vm910_vm7, %v869_v1 }
  0xa6   : > { %1661 = vrot.lane.b32.xlu1 %v2605_v60, %s2961_s13 }
  0xa9   : > { %1645 = vrot.lane.b32.xlu0 %v3485_v53, %s2961_s13 }
  0xaa   : > { %1663 = vrot.lane.b32.xlu1 %v3579_v7, %s2961_s13  ;;  %v865_v42 = vpop.permute.xlu0 %864 }
  0xab   : > { %912 = vst.msk [vmem:[#allocation2 + $0x8] sm:$0xff] %vm910_vm7, %v865_v42 }
  0xac   : > { %v873_v31 = vpop.permute.xlu1 %872 }
  0xad   : > { %1647 = vrot.lane.b32.xlu0 %v3462_v10, %s2961_s13  ;;  %916 = vst.msk [vmem:[#allocation2 + $0x28] sm:$0xff] %vm910_vm7, %v873_v31 }
  0xae   : > { %1138 = vrot.lane.b32.xlu1 %v3579_v7, %s2954_s16 }
  0xb1   : > { %1136 = vrot.lane.b32.xlu0 %v2605_v60, %s2954_s16  ;;  %v871_v49 = vpop.permute.xlu0 %870 }
  0xb2   : > { %1214 = vrot.lane.b32.xlu1 %v3520_v40, %s2955_s17  ;;  %915 = vst.msk [vmem:[#allocation2 + $0x20] sm:$0xff] %vm910_vm7, %v871_v49  ;;  %v4472_v40 = vld [vmem:[#allocation27_spill] sm:$0xff]  ;;  %v2852_v49 = vld [vmem:[%s3054_s9 + $0x5c] sm:$0x1] }
  0xb5   : > { %1198 = vrot.lane.b32.xlu0 %v3524_v45, %s2955_s17 }
  0xb6   : > { %1216 = vrot.lane.b32.xlu1 %v3532_v14, %s2955_s17  ;;  %v877_v53 = vpop.permute.xlu1 %876 }
  0xb7   : > { %918 = vst.msk [vmem:[#allocation2 + $0x38] sm:$0xff] %vm910_vm7, %v877_v53  ;;  %v1010_v53 = vrot.slane %v2852_v49, 5 }
  0xb9   : > { %1200 = vrot.lane.b32.xlu0 %v3536_v41, %s2955_s17  ;;  %v875_v25 = vpop.permute.xlu0 %874 }
  0xba   : > { %1317 = vrot.lane.b32.xlu1 %v4470_v22, %s2956_s23  ;;  %917 = vst.msk [vmem:[#allocation2 + $0x30] sm:$0xff] %vm910_vm7, %v875_v25  ;;  %v2853_v25 = vld [vmem:[%s3054_s9 + $0x54] sm:$0xf] }
  0xbd   : > { %1301 = vrot.lane.b32.xlu0 %v4471_v57, %s2956_s23 }
  0xbe   : > { %1319 = vrot.lane.b32.xlu1 %v4472_v40, %s2956_s23  ;;  %v881_v45 = vpop.permute.xlu1 %880 }
  0xbf   : > { %920 = vst.msk [vmem:[#allocation2 + $0x48] sm:$0xff] %vm910_vm7, %v881_v45 }
  0xc1   : > { %1303 = vrot.lane.b32.xlu0 %v4473_v56, %s2956_s23 }
  0xc2   : > { %1401 = vrot.lane.b32.xlu1 %v3579_v7, %s2957_s25  ;;  %v879_v54 = vpop.permute.xlu0 %878 }
  0xc3   : > { %919 = vst.msk [vmem:[#allocation2 + $0x40] sm:$0xff] %vm910_vm7, %v879_v54  ;;  %v4478_v54 = vld [vmem:[#allocation15_spill] sm:$0xff] }
  0xc5   : > { %1385 = vrot.lane.b32.xlu0 %v3462_v10, %s2957_s25 }
  0xc6   : > { %1403 = vrot.lane.b32.xlu1 %v3627_v32, %s2957_s25  ;;  %v885_v28 = vpop.permute.xlu1 %884 }
  0xc7   : > { %922 = vst.msk [vmem:[#allocation2 + $0x58] sm:$0xff] %vm910_vm7, %v885_v28 }
  0xc9   : > { %1387 = vrot.lane.b32.xlu0 %v3509_v0, %s2957_s25 }
  0xca   : > { %1479 = vrot.lane.b32.xlu1 %v3532_v14, %s2958_s26  ;;  %v4474_v14 = vld [vmem:[#allocation25_spill] sm:$0xff] }
  0xcb   : > { %v883_v18 = vpop.permute.xlu0 %882 }
  0xcc   : > { %921 = vst.msk [vmem:[#allocation2 + $0x50] sm:$0xff] %vm910_vm7, %v883_v18 }
  0xcd   : > { %1463 = vrot.lane.b32.xlu0 %v3536_v41, %s2958_s26 }
  0xce   : > { %1481 = vrot.lane.b32.xlu1 %v3594_v3, %s2958_s26  ;;  %v889_v10 = vpop.permute.xlu1 %888 }
  0xcf   : > { %924 = vst.msk [vmem:[#allocation2 + $0x68] sm:$0xff] %vm910_vm7, %v889_v10 }
  0xd1   : > { %1465 = vrot.lane.b32.xlu0 %v3566_v63, %s2958_s26 }
  0xd2   : > { %1581 = vrot.lane.b32.xlu1 %v4472_v40, %s2959_s7 }
  0xd3   : > { %v887_v7 = vpop.permute.xlu0 %886 }
  0xd4   : > { %923 = vst.msk [vmem:[#allocation2 + $0x60] sm:$0xff] %vm910_vm7, %v887_v7 }
  0xd5   : > { %1565 = vrot.lane.b32.xlu0 %v4473_v56, %s2959_s7 }
  0xd6   : > { %1583 = vrot.lane.b32.xlu1 %v4474_v14, %s2959_s7 }
  0xd8   : > { %v893_v41 = vpop.permute.xlu1 %892 }
  0xd9   : > { %1567 = vrot.lane.b32.xlu0 %v4475_v62, %s2959_s7  ;;  %926 = vst.msk [vmem:[#allocation2 + $0x78] sm:$0xff] %vm910_vm7, %v893_v41  ;;  %v3878_v41 = vld [vmem:[%s3054_s9 + $0xc4] sm:$0xf] }
  0xda   : > { %1665 = vrot.lane.b32.xlu1 %v3627_v32, %s2961_s13 }
  0xdb   : > { %v891_v48 = vpop.permute.xlu0 %890 }
  0xdc   : > { %925 = vst.msk [vmem:[#allocation2 + $0x70] sm:$0xff] %vm910_vm7, %v891_v48  ;;  %v3778_v12 = vpop.permute.xlu1 %931 }
  0xdd   : > { %1649 = vrot.lane.b32.xlu0 %v3509_v0, %s2961_s13 }
  0xde   : > { %1667 = vrot.lane.b32.xlu1 %v3638_v47, %s2961_s13 }
  0xdf   : > { %v3784_v61 = vpop.permute.xlu0 %929 }
  0xe0   : > { %v1119_v44 = vpop.permute.xlu1 %1118 }
  0xe1   : > { %1651 = vrot.lane.b32.xlu0 %v3487_v33, %s2961_s13  ;;  %1166 = vst.msk [vmem:[#allocation2 + $0x8] sm:$0xff] %vm1164_vm10, %v1119_v44 }
  0xe2   : > { %1142 = vrot.lane.b32.xlu1 %v3638_v47, %s2954_s16 }
  0xe3   : > { %v1117_v37 = vpop.permute.xlu0 %1116 }
  0xe4   : > { %1165 = vst.msk [vmem:[#allocation2] sm:$0xff] %vm1164_vm10, %v1117_v37  ;;  %v1123_v60 = vpop.permute.xlu1 %1122 }
  0xe5   : > { %1140 = vrot.lane.b32.xlu0 %v3627_v32, %s2954_s16  ;;  %1168 = vst.msk [vmem:[#allocation2 + $0x18] sm:$0xff] %vm1164_vm10, %v1123_v60  ;;  %v1284_v60 = vshrl.u32 %v3878_v41, 16 }
  0xe6   : > { %1218 = vrot.lane.b32.xlu1 %v3594_v3, %s2955_s17  ;;  %v1000_v3 = vrot.slane %v3196_v27, 5 }
  0xe7   : > { %v1121_v0 = vpop.permute.xlu0 %1120 }
  0xe8   : > { %1167 = vst.msk [vmem:[#allocation2 + $0x10] sm:$0xff] %vm1164_vm10, %v1121_v0  ;;  %v1127_v30 = vpop.permute.xlu1 %1126  ;;  %v1002_v36 = vrot.slane %v1000_v3, 4  ;;  %v1001_v23 = vsel %vm3393_vm5, %v2585_v8, %v1000_v3  ;;  %v1280_v0 = vshll.u32 %v3878_v41, 16 }
  0xe9   : > { %1202 = vrot.lane.b32.xlu0 %v3566_v63, %s2955_s17  ;;  %1170 = vst.msk [vmem:[#allocation2 + $0x28] sm:$0xff] %vm1164_vm10, %v1127_v30 }
  0xea   : > { %1220 = vrot.lane.b32.xlu1 %v3608_v19, %s2955_s17  ;;  %v1004_v15 = vsel %vm3393_vm5, %v1002_v36, %v1003_v11  ;;  %v305_v36 = vld [vmem:[%s3054_s9 + $0xc8] sm:$0x1] }
  0xeb   : > { %v1125_v13 = vpop.permute.xlu0 %1124  ;;  %v3832_v39 = vcombine.low %v1001_v23, %v1004_v15 }
  0xec   : > { %1169 = vst.msk [vmem:[#allocation2 + $0x20] sm:$0xff] %vm1164_vm10, %v1125_v13  ;;  %v1135_v32 = vpop.permute.xlu1 %1134 }
  0xed   : > { %1204 = vrot.lane.b32.xlu0 %v3586_v9, %s2955_s17  ;;  %1174 = vst.msk [vmem:[#allocation2 + $0x48] sm:$0xff] %vm1164_vm10, %v1135_v32 }
  0xee   : > { %1321 = vrot.lane.b32.xlu1 %v4474_v14, %s2956_s23  ;;  %v3875_v14 = vld [vmem:[%s3054_s9 + $0xc0] sm:$0xf] }
  0xef   : > { %v1133_v63 = vpop.permute.xlu0 %1132  ;;  %v1271_v44 = vshrl.u32 %v3875_v14, 16  ;;  %v1274_v37 = vshll.u32 %v3875_v14, 16 }
  0xf0   : > { %1173 = vst.msk [vmem:[#allocation2 + $0x40] sm:$0xff] %vm1164_vm10, %v1133_v63  ;;  %v1211_v4 = vpop.permute.xlu1 %1210  ;;  %v1282_v63 = vrot.slane %v1280_v0, 5 }
  0xf1   : > { %1305 = vrot.lane.b32.xlu0 %v4475_v62, %s2956_s23  ;;  %1251 = vst.msk [vmem:[#allocation2 + $0x40] sm:$0xff] %vm1242_vm11, %v1211_v4  ;;  %v1273_v32 = vrot.slane %v1271_v44, 4  ;;  %v1276_v3 = vrot.slane %v1274_v37, 5  ;;  %v1286_v4 = vrot.slane %v1284_v60, 4 }
  0xf2   : > { %1323 = vrot.lane.b32.xlu1 %v3428_v20, %s2956_s23 }
  0xf3   : > { %v1195_v6 = vpop.permute.xlu0 %1194  ;;  %v1287_v11 = vor.u32 %v1286_v4, %v1282_v63 }
  0xf4   : > { %1243 = vst.msk [vmem:[#allocation2] sm:$0xff] %vm1242_vm11, %v1195_v6  ;;  %v1213_v27 = vpop.permute.xlu1 %1212  ;;  %v1290_v6 = vshll.u32 %v305_v36, 16 }
  0xf5   : > { %1307 = vrot.lane.b32.xlu0 %v4477_v50, %s2956_s23  ;;  %1252 = vst.msk [vmem:[#allocation2 + $0x48] sm:$0xff] %vm1242_vm11, %v1213_v27 }
  0xf6   : > { %1405 = vrot.lane.b32.xlu1 %v3638_v47, %s2957_s25 }
  0xf7   : > { %v1197_v52 = vpop.permute.xlu0 %1196 }
  0xf8   : > { %1244 = vst.msk [vmem:[#allocation2 + $0x8] sm:$0xff] %vm1242_vm11, %v1197_v52  ;;  %v1314_v35 = vpop.permute.xlu1 %1313  ;;  %v1288_v52 = vrot.slane %v1287_v11, 4 }
  0xf9   : > { %1389 = vrot.lane.b32.xlu0 %v3487_v33, %s2957_s25  ;;  %1354 = vst.msk [vmem:[#allocation2 + $0x40] sm:$0xff] %vm1345_vm12, %v1314_v35  ;;  %v1292_v35 = vrot.slane %v1290_v6, 5 }
  0xfa   : > { %1407 = vrot.lane.b32.xlu1 %v3649_v55, %s2957_s25 }
  0xfb   : > { %v1298_v47 = vpop.permute.xlu0 %1297 }
  0xfc   : > { %1346 = vst.msk [vmem:[#allocation2] sm:$0xff] %vm1345_vm12, %v1298_v47  ;;  %v1316_v22 = vpop.permute.xlu1 %1315 }
  0xfd   : > { %1391 = vrot.lane.b32.xlu0 %v3832_v39, %s2957_s25  ;;  %1355 = vst.msk [vmem:[#allocation2 + $0x48] sm:$0xff] %vm1345_vm12, %v1316_v22 }
  0xfe   : > { %1483 = vrot.lane.b32.xlu1 %v3608_v19, %s2958_s26 }
  0xff   : > { %v1300_v33 = vpop.permute.xlu0 %1299 }
 0x100   : > { %1347 = vst.msk [vmem:[#allocation2 + $0x8] sm:$0xff] %vm1345_vm12, %v1300_v33  ;;  %v1398_v34 = vpop.permute.xlu1 %1397 }
 0x101   : > { %1467 = vrot.lane.b32.xlu0 %v3586_v9, %s2958_s26  ;;  %1438 = vst.msk [vmem:[#allocation2 + $0x40] sm:$0xff] %vm1429_vm13, %v1398_v34  ;;  %v2851_v9 = vld [vmem:[%s3054_s9 + $0x58] sm:$0xf] }
 0x102   : > { %1485 = vrot.lane.b32.xlu1 %v3604_v5, %s2958_s26  ;;  %v1007_v19 = vrot.slane %v2851_v9, 5 }
 0x103   : > { %v1382_v1 = vpop.permute.xlu0 %1381 }
 0x104   : > { %1430 = vst.msk [vmem:[#allocation2] sm:$0xff] %vm1429_vm13, %v1382_v1  ;;  %v1400_v57 = vpop.permute.xlu1 %1399  ;;  %v1009_v40 = vrot.slane %v1007_v19, 4  ;;  %v1293_v1 = vsel %vm3092_vm2, %v1288_v52, %v1292_v35 }
 0x105   : > { %1469 = vrot.lane.b32.xlu0 %v3575_v29, %s2958_s26  ;;  %1439 = vst.msk [vmem:[#allocation2 + $0x48] sm:$0xff] %vm1429_vm13, %v1400_v57 }
 0x106   : > { %1585 = vrot.lane.b32.xlu1 %v3428_v20, %s2959_s7  ;;  %v2586_v20 = vrot.slane %v2853_v25, 9  ;;  %v1011_v18 = vsel %vm3393_vm5, %v1009_v40, %v1010_v53  ;;  %v3943_v40 = vld [vmem:[%s3054_s9 + $0xd0] sm:$0xf] }
 0x107   : > { %v1384_v42 = vpop.permute.xlu0 %1383 }
 0x108   : > { %1431 = vst.msk [vmem:[#allocation2 + $0x8] sm:$0xff] %vm1429_vm13, %v1384_v42  ;;  %v1476_v31 = vpop.permute.xlu1 %1475  ;;  %v1008_v28 = vsel %vm3393_vm5, %v2586_v20, %v1007_v19  ;;  %v2613_v19 = vrot.slane %v3875_v14, 9  ;;  %v3940_v20 = vld [vmem:[%s3054_s9 + $0xcc] sm:$0xf] }
 0x109   : > { %1569 = vrot.lane.b32.xlu0 %v4477_v50, %s2959_s7  ;;  %1516 = vst.msk [vmem:[#allocation2 + $0x40] sm:$0xff] %vm1507_vm14, %v1476_v31  ;;  %v3883_v62 = vcombine.low %v1008_v28, %v1011_v18  ;;  %v3912_v50 = vcombine.low %v3875_v14, %v3878_v41  ;;  %v1376_v31 = vrot.slane %v305_v36, 5  ;;  %v1535_v28 = vshrl.u32 %v3940_v20, 16  ;;  %v4479_v14 = vld [vmem:[#allocation19_spill] sm:$0xff] }
 0x10a   : > { %1587 = vrot.lane.b32.xlu1 %v3409_v17, %s2959_s7  ;;  %v1538_v18 = vshll.u32 %v3940_v20, 16  ;;  %v2617_v35 = vrot.slane %v3940_v20, 9 }
 0x10b   : > { %v1460_v45 = vpop.permute.xlu0 %1459  ;;  %v1537_v44 = vrot.slane %v1535_v28, 4 }
 0x10c   : > { %1508 = vst.msk [vmem:[#allocation2] sm:$0xff] %vm1507_vm14, %v1460_v45  ;;  %v1478_v56 = vpop.permute.xlu1 %1477  ;;  %v1540_v37 = vrot.slane %v1538_v18, 5 }
 0x10d   : > { %1571 = vrot.lane.b32.xlu0 %v4478_v54, %s2959_s7  ;;  %1517 = vst.msk [vmem:[#allocation2 + $0x48] sm:$0xff] %vm1507_vm14, %v1478_v56 }
 0x10e   : > { %1669 = vrot.lane.b32.xlu1 %v3649_v55, %s2961_s13 }
 0x10f   : > { %v1462_v10 = vpop.permute.xlu0 %1461 }
 0x110   : > { %1509 = vst.msk [vmem:[#allocation2 + $0x8] sm:$0xff] %vm1507_vm14, %v1462_v10  ;;  %v1578_v7 = vpop.permute.xlu1 %1577  ;;  %v1548_v10 = vshrl.u32 %v3943_v40, 16 }
 0x111   : > { %1653 = vrot.lane.b32.xlu0 %v3832_v39, %s2961_s13  ;;  %1618 = vst.msk [vmem:[#allocation2 + $0x40] sm:$0xff] %vm1609_vm15, %v1578_v7 }
 0x112   : > { %1671 = vrot.lane.b32.xlu1 %v3679_v43, %s2961_s13  ;;  %v1550_v0 = vrot.slane %v1548_v10, 4 }
 0x113   : > { %v1562_v48 = vpop.permute.xlu0 %1561 }
 0x114   : > { %1610 = vst.msk [vmem:[#allocation2] sm:$0xff] %vm1609_vm15, %v1562_v48  ;;  %v1580_v30 = vpop.permute.xlu1 %1579 }
 0x115   : > { %1655 = vrot.lane.b32.xlu0 %v3883_v62, %s2961_s13  ;;  %1619 = vst.msk [vmem:[#allocation2 + $0x48] sm:$0xff] %vm1609_vm15, %v1580_v30 }
 0x116   : > { %1144 = vrot.lane.b32.xlu1 %v3649_v55, %s2954_s16  ;;  %v1277_v55 = vor.u32 %v1276_v3, %v1273_v32  ;;  %v1541_v3 = vor.u32 %v1540_v37, %v1537_v44 }
 0x117   : > { %v1564_v13 = vpop.permute.xlu0 %1563 }
 0x118   : > { %1611 = vst.msk [vmem:[#allocation2 + $0x8] sm:$0xff] %vm1609_vm15, %v1564_v13  ;;  %v1662_v8 = vpop.permute.xlu1 %1661  ;;  %v1278_v15 = vrot.slane %v1277_v55, 4  ;;  %v308_v13 = vld [vmem:[%s3054_s9 + $0xd4] sm:$0x1]  ;;  %v1542_v36 = vrot.slane %v1541_v3, 4  ;;  %s2962_s9 = smov 126  }
 0x119   : > { %1128 = vrot.lane.b32.xlu0 %v3832_v39, %s2954_s16  ;;  %1702 = vst.msk [vmem:[#allocation2 + $0x40] sm:$0xff] %vm1693_vm0, %v1662_v8  ;;  %v1640_v26 = vrot.slane %v308_v13, 5 }
 0x11a   : > { %1146 = vrot.lane.b32.xlu1 %v3679_v43, %s2954_s16  ;;  %v1283_v34 = vsel %vm3092_vm2, %v1278_v15, %v1282_v63  ;;  %v1554_v63 = vshll.u32 %v308_v13, 16 }
 0x11b   : > { %v1646_v24 = vpop.permute.xlu0 %1645  ;;  %v3934_v9 = vcombine.low %v1283_v34, %v1293_v1 }
 0x11c   : > { %1694 = vst.msk [vmem:[#allocation2] sm:$0xff] %vm1693_vm0, %v1646_v24  ;;  %v1664_v27 = vpop.permute.xlu1 %1663  ;;  %v1556_v55 = vrot.slane %v1554_v63, 5 }
 0x11d   : > { %1130 = vrot.lane.b32.xlu0 %v3883_v62, %s2954_s16  ;;  %1703 = vst.msk [vmem:[#allocation2 + $0x48] sm:$0xff] %vm1693_vm0, %v1664_v27 }
 0x11e   : > { %1222 = vrot.lane.b32.xlu1 %v3604_v5, %s2955_s17  ;;  %v1373_v5 = vrot.slane %v3878_v41, 5 }
 0x11f   : > { %v1648_v23 = vpop.permute.xlu0 %1647 }
 0x120   : > { %1695 = vst.msk [vmem:[#allocation2 + $0x8] sm:$0xff] %vm1693_vm0, %v1648_v23  ;;  %v1139_v39 = vpop.permute.xlu1 %1138  ;;  %v1726_v47 = vld [vmem:[#allocation2 + $0x40] sm:$0xff]  ;;  %v1375_v42 = vrot.slane %v1373_v5, 4  ;;  %v1637_v23 = vrot.slane %v3943_v40, 5 }
 0x121   : > { %1206 = vrot.lane.b32.xlu0 %v3575_v29, %s2955_s17  ;;  %1176 = vst.msk [vmem:[#allocation2 + $0x58] sm:$0xff] %vm1164_vm10, %v1139_v39  ;;  %2690 = vmatprep.mubr.msk.bf16.mxu1 %vm1757_vm1, %v1726_v47 }
 0x122   : > { %1224 = vrot.lane.b32.xlu1 %v3912_v50, %s2955_s17  ;;  %v1377_v45 = vsel %vm3393_vm5, %v1375_v42, %v1376_v31  ;;  %v1639_v39 = vrot.slane %v1637_v23, 4 }
 0x123   : > { %v1137_v22 = vpop.permute.xlu0 %1136  ;;  %v1718_v33 = vld [vmem:[#allocation2] sm:$0xff] }
 0x124   : > { %1175 = vst.msk [vmem:[#allocation2 + $0x50] sm:$0xff] %vm1164_vm10, %v1137_v22  ;;  %2674 = vmatprep.mubr.msk.bf16.mxu0 %vm1757_vm1, %v1718_v33  ;;  %v1215_v29 = vpop.permute.xlu1 %1214  ;;  %v1727_v57 = vld [vmem:[#allocation2 + $0x48] sm:$0xff]  ;;  %v1641_v22 = vsel %vm3393_vm5, %v1639_v39, %v1640_v26 }
 0x125   : > { %1208 = vrot.lane.b32.xlu0 %v3590_v59, %s2955_s17  ;;  %1253 = vst.msk [vmem:[#allocation2 + $0x50] sm:$0xff] %vm1242_vm11, %v1215_v29  ;;  %2691 = vmatmul.mubr.msk.bf16.vlgmr.msra.gmra.mrb[0].mxu1 %vm1757_vm1, %v1727_v57  ;;  %v311_v57 = vld [vmem:[%s3414_s14 + $0x10] sm:$0x3] }
 0x126   : > { %1325 = vrot.lane.b32.xlu1 %v3409_v17, %s2956_s23  ;;  %v1374_v17 = vsel %vm3393_vm5, %v2613_v19, %v1373_v5  ;;  %v1638_v5 = vsel %vm3393_vm5, %v2617_v35, %v1637_v23 }
 0x127   : > { %v1199_v49 = vpop.permute.xlu0 %1198  ;;  %v1719_v53 = vld [vmem:[#allocation2 + $0x8] sm:$0xff]  ;;  %v2614_v41 = vcombine.low %v1374_v17, %v1377_v45  ;;  %v2618_v34 = vcombine.low %v1638_v5, %v1641_v22  ;;  %v1525_v45 = vrot.slane %v3451_v51, 2 }
 0x128   : > { %1245 = vst.msk [vmem:[#allocation2 + $0x10] sm:$0xff] %vm1242_vm11, %v1199_v49  ;;  %2675 = vmatmul.mubr.msk.bf16.vlgmr.msra.gmra.mrb[0].mxu0 %vm1757_vm1, %v1719_v53  ;;  %v1217_v25 = vpop.permute.xlu1 %1216  ;;  %v4036_v53 = vld [vmem:[%s3414_s14 + $0x8] sm:$0xff] }
 0x129   : > { %1309 = vrot.lane.b32.xlu0 %v4478_v54, %s2956_s23  ;;  %1254 = vst.msk [vmem:[#allocation2 + $0x58] sm:$0xff] %vm1242_vm11, %v1217_v25  ;;  %v1544_v54 = vshll.u32 %v3943_v40, 16  ;;  %v1526_v25 = vrot.slane %v4036_v53, 2 }
 0x12a   : > { %1327 = vrot.lane.b32.xlu1 %v3934_v9, %s2956_s23 }
 0x12b   : > { %v1201_v56 = vpop.permute.xlu0 %1200  ;;  %v1546_v60 = vrot.slane %v1544_v54, 5 }
 0x12c   : > { %1246 = vst.msk [vmem:[#allocation2 + $0x18] sm:$0xff] %vm1242_vm11, %v1201_v56  ;;  %v1318_v7 = vpop.permute.xlu1 %1317 }
 0x12d   : > { %1311 = vrot.lane.b32.xlu0 %v4479_v14, %s2956_s23  ;;  %1356 = vst.msk [vmem:[#allocation2 + $0x50] sm:$0xff] %vm1345_vm12, %v1318_v7  ;;  %v1547_v27 = vsel %vm3092_vm2, %v1542_v36, %v1546_v60 }
 0x12e   : > { %1409 = vrot.lane.b32.xlu1 %v3679_v43, %s2957_s25  ;;  %v1551_v43 = vor.u32 %v1550_v0, %v1546_v60 }
 0x12f   : > { %v1302_v48 = vpop.permute.xlu0 %1301 }
 0x130   : > { %1348 = vst.msk [vmem:[#allocation2 + $0x10] sm:$0xff] %vm1345_vm12, %v1302_v48  ;;  %v1320_v30 = vpop.permute.xlu1 %1319  ;;  %v1552_v24 = vrot.slane %v1551_v43, 4 }
 0x131   : > { %1393 = vrot.lane.b32.xlu0 %v3883_v62, %s2957_s25  ;;  %1357 = vst.msk [vmem:[#allocation2 + $0x58] sm:$0xff] %vm1345_vm12, %v1320_v30  ;;  %v2615_v62 = vcombine.low %v3940_v20, %v3943_v40  ;;  %v1528_v20 = vrot.slane %v311_v57, 2 }
 0x132   : > { %1411 = vrot.lane.b32.xlu1 %v2614_v41, %s2957_s25 }
 0x133   : > { %v1304_v32 = vpop.permute.xlu0 %1303  ;;  %v4048_v18 = vsel %vm1524_vm8, %v1526_v25, %v1528_v20 }
 0x134   : > { %1349 = vst.msk [vmem:[#allocation2 + $0x18] sm:$0xff] %vm1345_vm12, %v1304_v32  ;;  %v1402_v4 = vpop.permute.xlu1 %1401 }
 0x135   : > { %1395 = vrot.lane.b32.xlu0 %v3556_v21, %s2957_s25  ;;  %1440 = vst.msk [vmem:[#allocation2 + $0x50] sm:$0xff] %vm1429_vm13, %v1402_v4 }
 0x136   : > { %1487 = vrot.lane.b32.xlu1 %v3912_v50, %s2958_s26  ;;  %v1557_v50 = vsel %vm3092_vm2, %v1552_v24, %v1556_v55  ;;  %vm2397_vm2 = vcmask 130048  }
 0x137   : > { %v1386_v8 = vpop.permute.xlu0 %1385 }
 0x138   : > { %1432 = vst.msk [vmem:[#allocation2 + $0x10] sm:$0xff] %vm1429_vm13, %v1386_v8  ;;  %v1404_v11 = vpop.permute.xlu1 %1403 }
 0x139   : > { %1471 = vrot.lane.b32.xlu0 %v3590_v59, %s2958_s26  ;;  %1441 = vst.msk [vmem:[#allocation2 + $0x58] sm:$0xff] %vm1429_vm13, %v1404_v11  ;;  %v2616_v59 = vcombine.low %v1547_v27, %v1557_v50  ;;  %v2963_v50 = vmov 8  }
 0x13a   : > { %1489 = vrot.lane.b32.xlu1 %v2615_v62, %s2958_s26  ;;  %2773 = vset.pattern.permute.xlu0 %v2963_v50 }
 0x13b   : > { %v1388_v6 = vpop.permute.xlu0 %1387  ;;  %2772 = vset.pattern.permute.xlu1 %v2963_v50 }
 0x13c   : > { %1433 = vst.msk [vmem:[#allocation2 + $0x18] sm:$0xff] %vm1429_vm13, %v1388_v6  ;;  %v1480_v15 = vpop.permute.xlu1 %1479 }
 0x13d   : > { %1473 = vrot.lane.b32.xlu0 %v3499_v38, %s2958_s26  ;;  %1518 = vst.msk [vmem:[#allocation2 + $0x50] sm:$0xff] %vm1507_vm14, %v1480_v15  ;;  %s2647_s26 = sshll.u32 %s3019_s22, 8 }
 0x13e   : > { %1589 = vrot.lane.b32.xlu1 %v3934_v9, %s2959_s7  ;;  %v1264_v9 = vrot.slane %v311_v57, 1 }
 0x13f   : > { %v1464_v52 = vpop.permute.xlu0 %1463 }
 0x140   : > { %1510 = vst.msk [vmem:[#allocation2 + $0x10] sm:$0xff] %vm1507_vm14, %v1464_v52  ;;  %v1482_v47 = vpop.permute.xlu1 %1481 }
 0x141   : > { %1573 = vrot.lane.b32.xlu0 %v4479_v14, %s2959_s7  ;;  %1519 = vst.msk [vmem:[#allocation2 + $0x58] sm:$0xff] %vm1507_vm14, %v1482_v47 }
 0x142   : > { %1591 = vrot.lane.b32.xlu1 %v2616_v59, %s2959_s7 }
 0x143   : > { %v1466_v38 = vpop.permute.xlu0 %1465 }
 0x144   : > { %1511 = vst.msk [vmem:[#allocation2 + $0x18] sm:$0xff] %vm1507_vm14, %v1466_v38  ;;  %v1582_v33 = vpop.permute.xlu1 %1581 }
 0x145   : > { %1575 = vrot.lane.b32.xlu0 %v4464_v2, %s2959_s7  ;;  %1620 = vst.msk [vmem:[#allocation2 + $0x50] sm:$0xff] %vm1609_vm15, %v1582_v33  ;;  %v1262_v2 = vrot.slane %v3431_v46, 1  ;;  %s4306_s7 = scalar_lea.hbm %s4403_s5, %s2647_s26 }
 0x146   : > { %1673 = vrot.lane.b32.xlu1 %v2614_v41, %s2961_s13 }
 0x147   : > { %v1566_v1 = vpop.permute.xlu0 %1565  ;;  %v4024_v31 = vsel %vm1260_vm9, %v1262_v2, %v1264_v9 }
 0x148   : > { %1612 = vst.msk [vmem:[#allocation2 + $0x10] sm:$0xff] %vm1609_vm15, %v1566_v1  ;;  %v1584_v29 = vpop.permute.xlu1 %1583 }
 0x149   : > { %1657 = vrot.lane.b32.xlu0 %v3556_v21, %s2961_s13  ;;  %1621 = vst.msk [vmem:[#allocation2 + $0x58] sm:$0xff] %vm1609_vm15, %v1584_v29  ;;  %v1261_v21 = vrot.slane %v3451_v51, 1 }
 0x14a   : > { %1675 = vrot.lane.b32.xlu1 %v2618_v34, %s2961_s13 }
 0x14b   : > { %v1568_v58 = vpop.permute.xlu0 %1567 }
 0x14c   : > { %1613 = vst.msk [vmem:[#allocation2 + $0x18] sm:$0xff] %vm1609_vm15, %v1568_v58  ;;  %v1666_v19 = vpop.permute.xlu1 %1665 }
 0x14d   : > { %1659 = vrot.lane.b32.xlu0 %v3540_v16, %s2961_s13  ;;  %1704 = vst.msk [vmem:[#allocation2 + $0x50] sm:$0xff] %vm1693_vm0, %v1666_v19  ;;  %v4033_v16 = vsel %vm1260_vm9, %v1261_v21, %v1262_v2  ;;  %s2862_s13 = scalar_lea.vmem %s2861_s12, 512 }
 0x14e   : > { %1183 = vrot.lane.b32.xlu1 %v3431_v46, %s2962_s9 }
 0x14f   : > { %v1650_v42 = vpop.permute.xlu0 %1649 }
 0x150   : > { %1696 = vst.msk [vmem:[#allocation2 + $0x10] sm:$0xff] %vm1693_vm0, %v1650_v42  ;;  %v1668_v49 = vpop.permute.xlu1 %1667 }
 0x151   : > { %1181 = vrot.lane.b32.xlu0 %v3451_v51, %s2962_s9  ;;  %1705 = vst.msk [vmem:[#allocation2 + $0x58] sm:$0xff] %vm1693_vm0, %v1668_v49  ;;  %v4059_v51 = vsel %vm1524_vm8, %v1525_v45, %v1526_v25 }
 0x152   : > { %1364 = vrot.lane.b32.xlu1 %v4024_v31, %s2953_s15 }
 0x153   : > { %v1652_v46 = vpop.permute.xlu0 %1651 }
 0x154   : > { %1697 = vst.msk [vmem:[#allocation2 + $0x18] sm:$0xff] %vm1693_vm0, %v1652_v46  ;;  %v1143_v40 = vpop.permute.xlu1 %1142  ;;  %v1728_v17 = vld [vmem:[#allocation2 + $0x50] sm:$0xff] }
 0x155   : > { %1362 = vrot.lane.b32.xlu0 %v4033_v16, %s2953_s15  ;;  %1178 = vst.msk [vmem:[#allocation2 + $0x68] sm:$0xff] %vm1164_vm10, %v1143_v40  ;;  %2694 = vmatprep.mubr.msk.bf16.mxu1 %vm1757_vm1, %v1728_v17 }
 0x156   : > { %1448 = vrot.lane.b32.xlu1 %v4024_v31, %s2962_s9 }
 0x157   : > { %v1141_v56 = vpop.permute.xlu0 %1140  ;;  %v1720_v28 = vld [vmem:[#allocation2 + $0x10] sm:$0xff] }
 0x158   : > { %1177 = vst.msk [vmem:[#allocation2 + $0x60] sm:$0xff] %vm1164_vm10, %v1141_v56  ;;  %2678 = vmatprep.mubr.msk.bf16.mxu0 %vm1757_vm1, %v1720_v28  ;;  %v1219_v10 = vpop.permute.xlu1 %1218  ;;  %v1729_v54 = vld [vmem:[#allocation2 + $0x58] sm:$0xff]  ;;  %v426_v28 = vmax.f32 %v4036_v53, 0.0 }
 0x159   : > { %1446 = vrot.lane.b32.xlu0 %v4033_v16, %s2962_s9  ;;  %1255 = vst.msk [vmem:[#allocation2 + $0x60] sm:$0xff] %vm1242_vm11, %v1219_v10  ;;  %2695 = vmatmul.mubr.msk.bf16.gmra.mrb[4].mxu1 %vm1757_vm1, %v1729_v54 }
 0x15a   : > { %1628 = vrot.lane.b32.xlu1 %v4048_v18, %s2953_s15 }
 0x15b   : > { %v1203_v7 = vpop.permute.xlu0 %1202  ;;  %v1721_v14 = vld [vmem:[#allocation2 + $0x18] sm:$0xff] }
 0x15c   : > { %1247 = vst.msk [vmem:[#allocation2 + $0x20] sm:$0xff] %vm1242_vm11, %v1203_v7  ;;  %2679 = vmatmul.mubr.msk.bf16.gmra.mrb[4].mxu0 %vm1757_vm1, %v1721_v14  ;;  %v1221_v41 = vpop.permute.xlu1 %1220  ;;  %v2855_v7 = vld [vmem:[%s3414_s14] sm:$0xff]  ;;  %s4134_s14 = sand.u32 1, %s2942_s19  }
 0x15d   : > { %1626 = vrot.lane.b32.xlu0 %v4059_v51, %s2953_s15  ;;  %1256 = vst.msk [vmem:[#allocation2 + $0x68] sm:$0xff] %vm1242_vm11, %v1221_v41  ;;  %v425_v14 = vmax.f32 %v2855_v7, 0.0  ;;  %v936_v41 = vmax.f32 %v426_v28, %v3778_v12  ;;  %s2543_s15 = sshll.u32 %s4134_s14, 4  ;;  %s2406_s8 = scalar_lea.sflag [#allocation6], %s4134_s14 }
 0x15e   : > { %1712 = vrot.lane.b32.xlu1 %v4048_v18, %s2962_s9  ;;  %s4141_s16 = scalar_lea.vmem [#allocation5], %s2543_s15 }
 0x15f   : > { %v1205_v48 = vpop.permute.xlu0 %1204  ;;  %v935_v53 = vmax.f32 %v425_v14, %v3784_v61  ;;  %s2433_s25 = sshll.u32 %s4141_s16, 4  ;;  %s4299_s25 = int_to_ptr.vmem [resolvable:$true] %s2433_s25 }
 0x160   : > { %1248 = vst.msk [vmem:[#allocation2 + $0x28] sm:$0xff] %vm1242_vm11, %v1205_v48  ;;  %v1322_v44 = vpop.permute.xlu1 %1321  ;;  %s2856_s10 = scalar_lea.vmem %s4299_s25, 256  ;;  %p2863_p0 = scmp.lt.s32.totalorder %s4299_s25, %s2861_s12 }
 0x161   : > { %1710 = vrot.lane.b32.xlu0 %v4059_v51, %s2962_s9  ;;  %1358 = vst.msk [vmem:[#allocation2 + $0x60] sm:$0xff] %vm1345_vm12, %v1322_v44  ;;  %p2857_p11 = scmp.ne.s32.totalorder %s4299_s25, %s2856_s10  ;;  %p2864_p1 = scmp.lt.s32.totalorder %s2862_s13, %s2856_s10 }
 0x163   : > { %v1306_v37 = vpop.permute.xlu0 %1305  ;;  %p2858_p12 = pnand %p2857_p11, %p3036_p5  ;;  %p2865_p2 = por %p2864_p1, %p2863_p0 }
 0x164   : > { %1350 = vst.msk [vmem:[#allocation2 + $0x20] sm:$0xff] %vm1345_vm12, %v1306_v37  ;;  %v1324_v60 = vpop.permute.xlu1 %1323 }
 0x165   : > { %1359 = vst.msk [vmem:[#allocation2 + $0x68] sm:$0xff] %vm1345_vm12, %v1324_v60  ;;  %p2859_p13 = pneg %p2858_p12 }
 0x167   : > { %v1308_v0 = vpop.permute.xlu0 %1307  ;;  %p2866_p3 = pnand %p2865_p2, %p2859_p13 }
 0x168   : > { %1351 = vst.msk [vmem:[#allocation2 + $0x28] sm:$0xff] %vm1345_vm12, %v1308_v0  ;;  %v1406_v30 = vpop.permute.xlu1 %1405 }
 0x169   : > { %1442 = vst.msk [vmem:[#allocation2 + $0x60] sm:$0xff] %vm1429_vm13, %v1406_v30 }
 0x16b   : > { %v1390_v13 = vpop.permute.xlu0 %1389 }
 0x16c   : > { %1434 = vst.msk [vmem:[#allocation2 + $0x20] sm:$0xff] %vm1429_vm13, %v1390_v13  ;;  %v1408_v32 = vpop.permute.xlu1 %1407 }
 0x16d   : > { %1443 = vst.msk [vmem:[#allocation2 + $0x68] sm:$0xff] %vm1429_vm13, %v1408_v32 }
 0x16f   : > { %v1392_v3 = vpop.permute.xlu0 %1391 }
 0x170   : > { %1435 = vst.msk [vmem:[#allocation2 + $0x28] sm:$0xff] %vm1429_vm13, %v1392_v3  ;;  %v1484_v43 = vpop.permute.xlu1 %1483 }
 0x171   : > { %1520 = vst.msk [vmem:[#allocation2 + $0x60] sm:$0xff] %vm1507_vm14, %v1484_v43 }
 0x173   : > { %v1468_v63 = vpop.permute.xlu0 %1467 }
 0x174   : > { %1512 = vst.msk [vmem:[#allocation2 + $0x20] sm:$0xff] %vm1507_vm14, %v1468_v63  ;;  %v1486_v4 = vpop.permute.xlu1 %1485 }
 0x175   : > { %1521 = vst.msk [vmem:[#allocation2 + $0x68] sm:$0xff] %vm1507_vm14, %v1486_v4 }
 0x177   : > { %v1470_v62 = vpop.permute.xlu0 %1469 }
 0x178   : > { %1513 = vst.msk [vmem:[#allocation2 + $0x28] sm:$0xff] %vm1507_vm14, %v1470_v62  ;;  %v1586_v8 = vpop.permute.xlu1 %1585 }
 0x179   : > { %1622 = vst.msk [vmem:[#allocation2 + $0x60] sm:$0xff] %vm1609_vm15, %v1586_v8 }
 0x17b   : > { %v1570_v36 = vpop.permute.xlu0 %1569 }
 0x17c   : > { %1614 = vst.msk [vmem:[#allocation2 + $0x20] sm:$0xff] %vm1609_vm15, %v1570_v36  ;;  %v1588_v24 = vpop.permute.xlu1 %1587 }
 0x17d   : > { %1623 = vst.msk [vmem:[#allocation2 + $0x68] sm:$0xff] %vm1609_vm15, %v1588_v24 }
 0x17f   : > { %v1572_v55 = vpop.permute.xlu0 %1571 }
 0x180   : > { %1615 = vst.msk [vmem:[#allocation2 + $0x28] sm:$0xff] %vm1609_vm15, %v1572_v55  ;;  %v1670_v11 = vpop.permute.xlu1 %1669 }
 0x181   : > { %1706 = vst.msk [vmem:[#allocation2 + $0x60] sm:$0xff] %vm1693_vm0, %v1670_v11 }
 0x183   : > { %v1654_v6 = vpop.permute.xlu0 %1653 }
 0x184   : > { %1698 = vst.msk [vmem:[#allocation2 + $0x20] sm:$0xff] %vm1693_vm0, %v1654_v6  ;;  %v1672_v27 = vpop.permute.xlu1 %1671 }
 0x185   : > { %1707 = vst.msk [vmem:[#allocation2 + $0x68] sm:$0xff] %vm1693_vm0, %v1672_v27 }
 0x187   : > { %v1656_v23 = vpop.permute.xlu0 %1655 }
 0x188   : > { %1699 = vst.msk [vmem:[#allocation2 + $0x28] sm:$0xff] %vm1693_vm0, %v1656_v23  ;;  %v1145_v15 = vpop.permute.xlu1 %1144  ;;  %v1730_v59 = vld [vmem:[#allocation2 + $0x60] sm:$0xff] }
 0x189   : > { %1179 = vst.msk [vmem:[#allocation2 + $0x70] sm:$0xff] %vm1164_vm10, %v1145_v15  ;;  %2698 = vmatprep.mubr.msk.bf16.mxu1 %vm1757_vm1, %v1730_v59 }
 0x18b   : > { %v1129_v52 = vpop.permute.xlu0 %1128  ;;  %v1722_v35 = vld [vmem:[#allocation2 + $0x20] sm:$0xff] }
 0x18c   : > { %1171 = vst.msk [vmem:[#allocation2 + $0x30] sm:$0xff] %vm1164_vm10, %v1129_v52  ;;  %2682 = vmatprep.mubr.msk.bf16.mxu0 %vm1757_vm1, %v1722_v35  ;;  %v1147_v39 = vpop.permute.xlu1 %1146  ;;  %v1731_v26 = vld [vmem:[#allocation2 + $0x68] sm:$0xff] }
 0x18d   : > { %1180 = vst.msk [vmem:[#allocation2 + $0x78] sm:$0xff] %vm1164_vm10, %v1147_v39  ;;  %2699 = vmatmul.mubr.msk.bf16.gmra.mrb[8].mxu1 %vm1757_vm1, %v1731_v26 }
 0x18f   : > { %v1131_v47 = vpop.permute.xlu0 %1130  ;;  %v1723_v38 = vld [vmem:[#allocation2 + $0x28] sm:$0xff] }
 0x190   : > { %1172 = vst.msk [vmem:[#allocation2 + $0x38] sm:$0xff] %vm1164_vm10, %v1131_v47  ;;  %2683 = vmatmul.mubr.msk.bf16.gmra.mrb[8].mxu0 %vm1757_vm1, %v1723_v38  ;;  %v1223_v5 = vpop.permute.xlu1 %1222 }
 0x191   : > { %1257 = vst.msk [vmem:[#allocation2 + $0x70] sm:$0xff] %vm1242_vm11, %v1223_v5 }
 0x193   : > { %v1207_v22 = vpop.permute.xlu0 %1206 }
 0x194   : > { %1249 = vst.msk [vmem:[#allocation2 + $0x30] sm:$0xff] %vm1242_vm11, %v1207_v22  ;;  %v1225_v33 = vpop.permute.xlu1 %1224 }
 0x195   : > { %1258 = vst.msk [vmem:[#allocation2 + $0x78] sm:$0xff] %vm1242_vm11, %v1225_v33 }
 0x197   : > { %v1209_v34 = vpop.permute.xlu0 %1208 }
 0x198   : > { %1250 = vst.msk [vmem:[#allocation2 + $0x38] sm:$0xff] %vm1242_vm11, %v1209_v34  ;;  %v1326_v1 = vpop.permute.xlu1 %1325 }
 0x199   : > { %1360 = vst.msk [vmem:[#allocation2 + $0x70] sm:$0xff] %vm1345_vm12, %v1326_v1 }
 0x19b   : > { %v1310_v29 = vpop.permute.xlu0 %1309 }
 0x19c   : > { %1352 = vst.msk [vmem:[#allocation2 + $0x30] sm:$0xff] %vm1345_vm12, %v1310_v29  ;;  %v1328_v57 = vpop.permute.xlu1 %1327 }
 0x19d   : > { %1361 = vst.msk [vmem:[#allocation2 + $0x78] sm:$0xff] %vm1345_vm12, %v1328_v57 }
 0x19f   : > { %v1312_v58 = vpop.permute.xlu0 %1311 }
 0x1a0   : > { %1353 = vst.msk [vmem:[#allocation2 + $0x38] sm:$0xff] %vm1345_vm12, %v1312_v58  ;;  %v1410_v2 = vpop.permute.xlu1 %1409 }
 0x1a1   : > { %1444 = vst.msk [vmem:[#allocation2 + $0x70] sm:$0xff] %vm1429_vm13, %v1410_v2 }
 0x1a3   : > { %v1394_v9 = vpop.permute.xlu0 %1393 }
 0x1a4   : > { %1436 = vst.msk [vmem:[#allocation2 + $0x30] sm:$0xff] %vm1429_vm13, %v1394_v9  ;;  %v1412_v19 = vpop.permute.xlu1 %1411 }
 0x1a5   : > { %1445 = vst.msk [vmem:[#allocation2 + $0x78] sm:$0xff] %vm1429_vm13, %v1412_v19 }
 0x1a7   : > { %v1396_v21 = vpop.permute.xlu0 %1395 }
 0x1a8   : > { %1437 = vst.msk [vmem:[#allocation2 + $0x38] sm:$0xff] %vm1429_vm13, %v1396_v21  ;;  %v1488_v42 = vpop.permute.xlu1 %1487 }
 0x1a9   : > { %1522 = vst.msk [vmem:[#allocation2 + $0x70] sm:$0xff] %vm1507_vm14, %v1488_v42 }
 0x1ab   : > { %v1472_v49 = vpop.permute.xlu0 %1471 }
 0x1ac   : > { %1514 = vst.msk [vmem:[#allocation2 + $0x30] sm:$0xff] %vm1507_vm14, %v1472_v49  ;;  %v1490_v46 = vpop.permute.xlu1 %1489 }
 0x1ad   : > { %1523 = vst.msk [vmem:[#allocation2 + $0x78] sm:$0xff] %vm1507_vm14, %v1490_v46 }
 0x1af   : > { %v1474_v25 = vpop.permute.xlu0 %1473 }
 0x1b0   : > { %1515 = vst.msk [vmem:[#allocation2 + $0x38] sm:$0xff] %vm1507_vm14, %v1474_v25  ;;  %v1590_v20 = vpop.permute.xlu1 %1589 }
 0x1b1   : > { %1624 = vst.msk [vmem:[#allocation2 + $0x70] sm:$0xff] %vm1609_vm15, %v1590_v20 }
 0x1b3   : > { %v1574_v40 = vpop.permute.xlu0 %1573 }
 0x1b4   : > { %1616 = vst.msk [vmem:[#allocation2 + $0x30] sm:$0xff] %vm1609_vm15, %v1574_v40  ;;  %v1592_v17 = vpop.permute.xlu1 %1591 }
 0x1b5   : > { %1625 = vst.msk [vmem:[#allocation2 + $0x78] sm:$0xff] %vm1609_vm15, %v1592_v17 }
 0x1b7   : > { %v1576_v45 = vpop.permute.xlu0 %1575 }
 0x1b8   : > { %1617 = vst.msk [vmem:[#allocation2 + $0x38] sm:$0xff] %vm1609_vm15, %v1576_v45  ;;  %v1674_v56 = vpop.permute.xlu1 %1673 }
 0x1b9   : > { %1708 = vst.msk [vmem:[#allocation2 + $0x70] sm:$0xff] %vm1693_vm0, %v1674_v56 }
 0x1bb   : > { %v1658_v10 = vpop.permute.xlu0 %1657 }
 0x1bc   : > { %1700 = vst.msk [vmem:[#allocation2 + $0x30] sm:$0xff] %vm1693_vm0, %v1658_v10  ;;  %v1676_v54 = vpop.permute.xlu1 %1675 }
 0x1bd   : > { %1709 = vst.msk [vmem:[#allocation2 + $0x78] sm:$0xff] %vm1693_vm0, %v1676_v54 }
 0x1bf   : > { %v1660_v48 = vpop.permute.xlu0 %1659 }
 0x1c0   : > { %1701 = vst.msk [vmem:[#allocation2 + $0x38] sm:$0xff] %vm1693_vm0, %v1660_v48  ;;  %v1184_v44 = vpop.permute.xlu1 %1183  ;;  %v1732_v37 = vld [vmem:[#allocation2 + $0x70] sm:$0xff] }
 0x1c1   : > { %v1188_v60 = vmax.f32 %v936_v41, %v1184_v44  ;;  %2702 = vmatprep.mubr.msk.bf16.mxu1 %vm1757_vm1, %v1732_v37 }
 0x1c3   : > { %v1182_v0 = vpop.permute.xlu0 %1181  ;;  %v1724_v30 = vld [vmem:[#allocation2 + $0x30] sm:$0xff]  ;;  %v1269_v13 = vmax.f32 %v1188_v60, %v4024_v31 }
 0x1c4   : > { %v1187_v32 = vmax.f32 %v935_v53, %v1182_v0  ;;  %2686 = vmatprep.mubr.msk.bf16.mxu0 %vm1757_vm1, %v1724_v30  ;;  %v1365_v3 = vpop.permute.xlu1 %1364  ;;  %v1733_v12 = vld [vmem:[#allocation2 + $0x78] sm:$0xff] }
 0x1c5   : > { %2703 = vmatmul.mubr.msk.bf16.gmra.mrb[12].mxu1 %vm1757_vm1, %v1733_v12  ;;  %v1369_v63 = vmax.f32 %v1269_v13, %v1365_v3 }
 0x1c6   : > { %v1268_v43 = vmax.f32 %v1187_v32, %v4033_v16 }
 0x1c7   : > { %v1363_v4 = vpop.permute.xlu0 %1362  ;;  %v1725_v62 = vld [vmem:[#allocation2 + $0x38] sm:$0xff] }
 0x1c8   : > { %2687 = vmatmul.mubr.msk.bf16.gmra.mrb[12].mxu0 %vm1757_vm1, %v1725_v62  ;;  %v1449_v61 = vpop.permute.xlu1 %1448  ;;  %v1368_v36 = vmax.f32 %v1268_v43, %v1363_v4 }
 0x1c9   : > { %v1453_v8 = vmax.f32 %v1369_v63, %v1449_v61 }
 0x1cb   : > { %v1447_v31 = vpop.permute.xlu0 %1446  ;;  %v1533_v24 = vmax.f32 %v1453_v8, %v4048_v18 }
 0x1cc   : > { %v1452_v55 = vmax.f32 %v1368_v36, %v1447_v31  ;;  %v1629_v11 = vpop.permute.xlu1 %1628 }
 0x1cd   : > { %v1633_v6 = vmax.f32 %v1533_v24, %v1629_v11 }
 0x1ce   : > { %v1532_v16 = vmax.f32 %v1452_v55, %v4059_v51 }
 0x1cf   : > { %v1627_v27 = vpop.permute.xlu0 %1626 }
 0x1d0   : > { %v1713_v50 = vpop.permute.xlu1 %1712  ;;  %v1632_v15 = vmax.f32 %v1532_v16, %v1627_v27 }
 0x1d1   : > { %v1717_v23 = vmax.f32 %v1633_v6, %v1713_v50 }
 0x1d3   : > { %v1711_v59 = vpop.permute.xlu0 %1710  ;;  %2399 = vst.msk [vmem:[%s4141_s16 + $0x8] sm:$0xff] %vm2397_vm2, %v1717_v23 }
 0x1d4   : > { %v1716_v52 = vmax.f32 %v1632_v15, %v1711_v59 }
 0x1d6   : > { %2398 = vst.msk [vmem:[%s4141_s16] sm:$0xff] %vm2397_vm2, %v1716_v52 }
 0x1f8   : > { %v4145_v18 = vpop.f32.mrb[0].mxu1 }
 0x1f9   : > { %v4147_v35 = vpop.f32.mrb[1].mxu1  ;;  %v1990_v51 = vmul.f32 4.0, %v4145_v18 }
 0x1fa   : > { %v4150_v39 = vpop.f32.mrb[2].mxu1  ;;  %v1988_v2 = vmul.f32 4.0, %v4147_v35 }
 0x1fb   : > { %v4152_v26 = vpop.f32.mrb[0].mxu0  ;;  %v4154_v47 = vpop.f32.mrb[3].mxu1  ;;  %v2022_v1 = vmax.f32 %v1990_v51, 1e-05  ;;  %v1991_v19 = vmul.f32 4.0, %v4150_v39 }
 0x1fc   : > { %v1974_v38 = vmul.f32 4.0, %v4152_v26  ;;  %v4157_v5 = vpop.f32.mrb[1].mxu0  ;;  %v2020_v21 = vmax.f32 %v1988_v2, 1e-05  ;;  %v1989_v46 = vmul.f32 4.0, %v4154_v47 }
 0x1fd   : > { %v1972_v22 = vmul.f32 4.0, %v4157_v5  ;;  %v4160_v33 = vpop.f32.mrb[2].mxu0  ;;  %v2023_v49 = vmax.f32 %v1991_v19, 1e-05 }
 0x1fe   : > { %v2006_v34 = vmax.f32 %v1974_v38, 1e-05  ;;  %v1975_v29 = vmul.f32 4.0, %v4160_v33  ;;  %v4163_v57 = vpop.f32.mrb[3].mxu0  ;;  %v2021_v20 = vmax.f32 %v1989_v46, 1e-05 }
 0x1ff   : > { %v2004_v58 = vmax.f32 %v1972_v22, 1e-05  ;;  %v1973_v42 = vmul.f32 4.0, %v4163_v57 }
 0x200   : > { %2787 = vrcp.f32 %v2006_v34  ;;  %v2007_v9 = vmax.f32 %v1975_v29, 1e-05 }
 0x201   : > { %2789 = vrcp.f32 %v2004_v58  ;;  %v2005_v25 = vmax.f32 %v1973_v42, 1e-05 }
 0x202   : > { %2791 = vrcp.f32 %v2022_v1 }
 0x203   : > { %2793 = vrcp.f32 %v2007_v9 }
 0x204   : > { %2795 = vrcp.f32 %v2020_v21 }
 0x205   : > { %2797 = vrcp.f32 %v2023_v49 }
 0x206   : > { %2799 = vrcp.f32 %v2005_v25 }
 0x207   : > { %2801 = vrcp.f32 %v2021_v20 }
 0x20a   : > { %v2788_v40 = vpop.eup %2787 }
 0x20b   : > { %v2790_v17 = vpop.eup %2789  ;;  %2080 = vperm.xlu1 %2772, %v2788_v40  }
 0x20c   : > { %v2792_v45 = vpop.eup %2791  ;;  %2070 = vperm.xlu0 %2773, %v2790_v17  }
 0x20d   : > { %v2794_v56 = vpop.eup %2793 }
 0x20e   : > { %v2796_v28 = vpop.eup %2795 }
 0x20f   : > { %2160 = vperm.xlu1 %2772, %v2792_v45   ;;  %v2798_v10 = vpop.eup %2797 }
 0x210   : > { %2085 = vperm.xlu0 %2773, %v2794_v56   ;;  %v2800_v54 = vpop.eup %2799 }
 0x211   : > { %v2802_v7 = vpop.eup %2801 }
 0x213   : > { %2150 = vperm.xlu1 %2772, %v2796_v28  }
 0x214   : > { %2165 = vperm.xlu0 %2773, %v2798_v10  }
 0x217   : > { %2075 = vperm.xlu1 %2772, %v2800_v54  }
 0x218   : > { %2155 = vperm.xlu0 %2773, %v2802_v7  }
 0x22c   : > { %v4169_v14 = vpop.f32.mrb[4].mxu1 }
 0x22d   : > { %v1994_v41 = vmul.f32 4.0, %v4169_v14  ;;  %v4172_v48 = vpop.f32.mrb[5].mxu1 }
 0x22e   : > { %v4174_v44 = vpop.f32.mrb[6].mxu1  ;;  %v1992_v36 = vmul.f32 4.0, %v4172_v48 }
 0x22f   : > { %v4176_v37 = vpop.f32.mrb[4].mxu0  ;;  %v4178_v60 = vpop.f32.mrb[7].mxu1  ;;  %v2026_v30 = vmax.f32 %v1994_v41, 1e-05  ;;  %v1995_v43 = vmul.f32 4.0, %v4174_v44 }
 0x230   : > { %v1978_v53 = vmul.f32 4.0, %v4176_v37  ;;  %v4181_v0 = vpop.f32.mrb[5].mxu0  ;;  %v1993_v24 = vmul.f32 4.0, %v4178_v60  ;;  %v2024_v55 = vmax.f32 %v1992_v36, 1e-05 }
 0x231   : > { %v4183_v13 = vpop.f32.mrb[6].mxu0  ;;  %v1976_v63 = vmul.f32 4.0, %v4181_v0  ;;  %v2027_v61 = vmax.f32 %v1995_v43, 1e-05 }
 0x232   : > { %v2010_v32 = vmax.f32 %v1978_v53, 1e-05  ;;  %v1979_v3 = vmul.f32 4.0, %v4183_v13  ;;  %v4186_v12 = vpop.f32.mrb[7].mxu0  ;;  %v2025_v16 = vmax.f32 %v1993_v24, 1e-05 }
 0x233   : > { %v1977_v62 = vmul.f32 4.0, %v4186_v12  ;;  %v2008_v8 = vmax.f32 %v1976_v63, 1e-05 }
 0x234   : > { %2803 = vrcp.f32 %v2010_v32  ;;  %v2011_v4 = vmax.f32 %v1979_v3, 1e-05 }
 0x235   : > { %2805 = vrcp.f32 %v2026_v30  ;;  %v2009_v31 = vmax.f32 %v1977_v62, 1e-05 }
 0x236   : > { %2807 = vrcp.f32 %v2011_v4 }
 0x237   : > { %2809 = vrcp.f32 %v2027_v61 }
 0x238   : > { %2811 = vrcp.f32 %v2008_v8 }
 0x239   : > { %2813 = vrcp.f32 %v2009_v31 }
 0x23a   : > { %2815 = vrcp.f32 %v2024_v55 }
 0x23b   : > { %2817 = vrcp.f32 %v2025_v16 }
 0x23e   : > { %v2804_v11 = vpop.eup %2803 }
 0x23f   : > { %v2806_v6 = vpop.eup %2805  ;;  %2100 = vperm.xlu1 %2772, %v2804_v11  }
 0x240   : > { %v2808_v27 = vpop.eup %2807 }
 0x241   : > { %2105 = vperm.xlu0 %2773, %v2808_v27   ;;  %v2810_v50 = vpop.eup %2809 }
 0x242   : > { %v2812_v23 = vpop.eup %2811 }
 0x243   : > { %2180 = vperm.xlu1 %2772, %v2806_v6   ;;  %v2814_v15 = vpop.eup %2813 }
 0x244   : > { %v2816_v59 = vpop.eup %2815 }
 0x245   : > { %2185 = vperm.xlu0 %2773, %v2810_v50   ;;  %v2818_v52 = vpop.eup %2817 }
 0x247   : > { %2090 = vperm.xlu1 %2772, %v2812_v23  }
 0x249   : > { %2095 = vperm.xlu0 %2773, %v2814_v15  }
 0x24b   : > { %2170 = vperm.xlu1 %2772, %v2816_v59  }
 0x24d   : > { %2175 = vperm.xlu0 %2773, %v2818_v52  }
 0x260   : > { %v4193_v51 = vpop.f32.mrb[8].mxu1 }
 0x261   : > { %v1998_v38 = vmul.f32 4.0, %v4193_v51  ;;  %v4196_v22 = vpop.f32.mrb[9].mxu1 }
 0x262   : > { %v4198_v34 = vpop.f32.mrb[10].mxu1  ;;  %v1996_v56 = vmul.f32 4.0, %v4196_v22 }
 0x263   : > { %v4200_v1 = vpop.f32.mrb[8].mxu0  ;;  %v4202_v29 = vpop.f32.mrb[11].mxu1  ;;  %v2030_v9 = vmax.f32 %v1998_v38, 1e-05  ;;  %v1999_v46 = vmul.f32 4.0, %v4198_v34 }
 0x264   : > { %v1982_v58 = vmul.f32 4.0, %v4200_v1  ;;  %v4205_v2 = vpop.f32.mrb[9].mxu0  ;;  %v1997_v10 = vmul.f32 4.0, %v4202_v29  ;;  %v2028_v54 = vmax.f32 %v1996_v56, 1e-05 }
 0x265   : > { %v4207_v19 = vpop.f32.mrb[10].mxu0  ;;  %v1980_v25 = vmul.f32 4.0, %v4205_v2  ;;  %v2031_v17 = vmax.f32 %v1999_v46, 1e-05 }
 0x266   : > { %v2014_v21 = vmax.f32 %v1982_v58, 1e-05  ;;  %v1983_v42 = vmul.f32 4.0, %v4207_v19  ;;  %v4210_v49 = vpop.f32.mrb[11].mxu0  ;;  %v2029_v41 = vmax.f32 %v1997_v10, 1e-05 }
 0x267   : > { %v1981_v40 = vmul.f32 4.0, %v4210_v49  ;;  %v2012_v45 = vmax.f32 %v1980_v25, 1e-05 }
 0x268   : > { %2819 = vrcp.f32 %v2014_v21  ;;  %v2015_v20 = vmax.f32 %v1983_v42, 1e-05 }
 0x269   : > { %2821 = vrcp.f32 %v2030_v9  ;;  %v2013_v28 = vmax.f32 %v1981_v40, 1e-05 }
 0x26a   : > { %2823 = vrcp.f32 %v2015_v20 }
 0x26b   : > { %2825 = vrcp.f32 %v2031_v17 }
 0x26c   : > { %2827 = vrcp.f32 %v2012_v45 }
 0x26d   : > { %2829 = vrcp.f32 %v2013_v28 }
 0x26e   : > { %2831 = vrcp.f32 %v2028_v54 }
 0x26f   : > { %2833 = vrcp.f32 %v2029_v41 }
 0x272   : > { %v2820_v7 = vpop.eup %2819 }
 0x273   : > { %v2822_v53 = vpop.eup %2821  ;;  %2120 = vperm.xlu1 %2772, %v2820_v7  }
 0x274   : > { %v2824_v30 = vpop.eup %2823 }
 0x275   : > { %2125 = vperm.xlu0 %2773, %v2824_v30   ;;  %v2826_v32 = vpop.eup %2825 }
 0x276   : > { %v2828_v3 = vpop.eup %2827 }
 0x277   : > { %2200 = vperm.xlu1 %2772, %v2822_v53   ;;  %v2830_v43 = vpop.eup %2829 }
 0x278   : > { %v2832_v63 = vpop.eup %2831 }
 0x279   : > { %2205 = vperm.xlu0 %2773, %v2826_v32   ;;  %v2834_v4 = vpop.eup %2833 }
 0x27b   : > { %2110 = vperm.xlu1 %2772, %v2828_v3  }
 0x27d   : > { %2115 = vperm.xlu0 %2773, %v2830_v43  }
 0x27f   : > { %2190 = vperm.xlu1 %2772, %v2832_v63  }
 0x281   : > { %2195 = vperm.xlu0 %2773, %v2834_v4  }
 0x28a   : > { %v2081_v10 = vpop.permute.xlu1 %2080 }
 0x28b   : > { %v2071_v41 = vpop.permute.xlu0 %2070 }
 0x28e   : > { %v2161_v30 = vpop.permute.xlu1 %2160 }
 0x28f   : > { %v2086_v32 = vpop.permute.xlu0 %2085 }
 0x292   : > { %v2151_v3 = vpop.permute.xlu1 %2150 }
 0x293   : > { %v2166_v43 = vpop.permute.xlu0 %2165 }
 0x296   : > { %v2076_v63 = vpop.permute.xlu1 %2075 }
 0x297   : > { %v2156_v4 = vpop.permute.xlu0 %2155 }
 0x298   : > { %v4217_v62 = vpop.f32.mrb[12].mxu1 }
 0x299   : > { %v2002_v61 = vmul.f32 4.0, %v4217_v62  ;;  %v4220_v8 = vpop.f32.mrb[13].mxu1 }
 0x29a   : > { %v4222_v36 = vpop.f32.mrb[14].mxu1  ;;  %v2000_v21 = vmul.f32 4.0, %v4220_v8 }
 0x29b   : > { %v4224_v31 = vpop.f32.mrb[12].mxu0  ;;  %v4226_v24 = vpop.f32.mrb[15].mxu1  ;;  %v2034_v16 = vmax.f32 %v2002_v61, 1e-05  ;;  %v2003_v15 = vmul.f32 4.0, %v4222_v36 }
 0x29c   : > { %v1986_v55 = vmul.f32 4.0, %v4224_v31  ;;  %v4229_v11 = vpop.f32.mrb[13].mxu0  ;;  %v2001_v46 = vmul.f32 4.0, %v4226_v24  ;;  %v2032_v25 = vmax.f32 %v2000_v21, 1e-05 }
 0x29d   : > { %v4231_v6 = vpop.f32.mrb[14].mxu0  ;;  %v1984_v59 = vmul.f32 4.0, %v4229_v11  ;;  %v2035_v58 = vmax.f32 %v2003_v15, 1e-05 }
 0x29e   : > { %v2018_v27 = vmax.f32 %v1986_v55, 1e-05  ;;  %v1987_v50 = vmul.f32 4.0, %v4231_v6  ;;  %v4234_v23 = vpop.f32.mrb[15].mxu0  ;;  %v2033_v40 = vmax.f32 %v2001_v46, 1e-05 }
 0x29f   : > { %v1985_v38 = vmul.f32 4.0, %v4234_v23  ;;  %v2016_v9 = vmax.f32 %v1984_v59, 1e-05  ;;  %v2245_v59 = vmul.f32 %v2156_v4, %v4154_v47  ;;  %v2229_v47 = vmul.f32 %v2076_v63, %v4163_v57 }
 0x2a0   : > { %2835 = vrcp.f32 %v2018_v27  ;;  %v2019_v52 = vmax.f32 %v1987_v50, 1e-05  ;;  %v4247_v50 = vld [vmem:[%s4401_s3] ss:$0 sm:$0xff] }
 0x2a1   : > { %2837 = vrcp.f32 %v2034_v16  ;;  %v2017_v42 = vmax.f32 %v1985_v38, 1e-05  ;;  %v2244_v16 = vmul.f32 %v2151_v3, %v4147_v35  ;;  %v2284_v21 = vadd.f32 %v4247_v50, %v2245_v59 }
 0x2a2   : > { %2839 = vrcp.f32 %v2019_v52 }
 0x2a3   : > { %2841 = vrcp.f32 %v2035_v58  ;;  %v2283_v15 = vadd.f32 %v4247_v50, %v2244_v16  ;;  %v2246_v58 = vmul.f32 %v4145_v18, %v2161_v30  ;;  %v2231_v30 = vmul.f32 %v4160_v33, %v2086_v32 }
 0x2a4   : > { %2843 = vrcp.f32 %v2016_v9 }
 0x2a5   : > { %2845 = vrcp.f32 %v2017_v42  ;;  %v2315_v9 = vmax.f32 %v2283_v15, 0.0  ;;  %v2228_v42 = vmul.f32 %v2071_v41, %v4157_v5  ;;  %v2285_v46 = vadd.f32 %v4247_v50, %v2246_v58 }
 0x2a6   : > { %2847 = vrcp.f32 %v2032_v25  ;;  %v2247_v25 = vmul.f32 %v4150_v39, %v2166_v43  ;;  %v2230_v5 = vmul.f32 %v4152_v26, %v2081_v10  ;;  %v2270_v63 = vadd.f32 %v4247_v50, %v2231_v30 }
 0x2a7   : > { %2849 = vrcp.f32 %v2033_v40  ;;  %v2267_v40 = vadd.f32 %v4247_v50, %v2228_v42 }
 0x2a8   : > { %v2286_v18 = vadd.f32 %v4247_v50, %v2247_v25  ;;  %v2302_v32 = vmax.f32 %v2270_v63, 0.0 }
 0x2aa   : > { %v2836_v20 = vpop.eup %2835  ;;  %v2318_v39 = vmax.f32 %v2286_v18, 0.0 }
 0x2ab   : > { %v2838_v17 = vpop.eup %2837  ;;  %2140 = vperm.xlu1 %2772, %v2836_v20   ;;  %v2316_v20 = vmax.f32 %v2284_v21, 0.0 }
 0x2ac   : > { %v2840_v45 = vpop.eup %2839 }
 0x2ad   : > { %2145 = vperm.xlu0 %2773, %v2840_v45   ;;  %v2842_v56 = vpop.eup %2841  ;;  %v2317_v45 = vmax.f32 %v2285_v46, 0.0 }
 0x2ae   : > { %v2844_v28 = vpop.eup %2843 }
 0x2af   : > { %2220 = vperm.xlu1 %2772, %v2838_v17   ;;  %v2846_v54 = vpop.eup %2845 }
 0x2b0   : > { %v2848_v7 = vpop.eup %2847 }
 0x2b1   : > { %2225 = vperm.xlu0 %2773, %v2842_v56   ;;  %v2850_v53 = vpop.eup %2849 }
 0x2b3   : > { %2130 = vperm.xlu1 %2772, %v2844_v28   ;;  %v2299_v28 = vmax.f32 %v2267_v40, 0.0 }
 0x2b5   : > { %2135 = vperm.xlu0 %2773, %v2846_v54   ;;  %v2268_v54 = vadd.f32 %v4247_v50, %v2229_v47 }
 0x2b7   : > { %2210 = vperm.xlu1 %2772, %v2848_v7   ;;  %v2300_v3 = vmax.f32 %v2268_v54, 0.0 }
 0x2b9   : > { %2215 = vperm.xlu0 %2773, %v2850_v53   ;;  %v2269_v53 = vadd.f32 %v4247_v50, %v2230_v5 }
 0x2bb   : > { %v2301_v43 = vmax.f32 %v2269_v53, 0.0 }
 0x2be   : > { %v2101_v61 = vpop.permute.xlu1 %2100 }
 0x2bf   : > { %v2234_v58 = vmul.f32 %v4176_v37, %v2101_v61 }
 0x2c0   : > { %v4241_v55 = vpop.permute.xlu0 %2105 }
 0x2c2   : > { %v2181_v27 = vpop.permute.xlu1 %2180 }
 0x2c3   : > { %v2250_v26 = vmul.f32 %v4169_v14, %v2181_v27 }
 0x2c4   : > { %v2186_v52 = vpop.permute.xlu0 %2185 }
 0x2c5   : > { %v2251_v16 = vmul.f32 %v4174_v44, %v2186_v52  ;;  %v2273_v44 = vadd.f32 %v4247_v50, %v2234_v58  ;;  %v2235_v52 = vmul.f32 %v4183_v13, %v4241_v55 }
 0x2c6   : > { %v2091_v38 = vpop.permute.xlu1 %2090 }
 0x2c7   : > { %v2232_v4 = vmul.f32 %v2091_v38, %v4181_v0  ;;  %v2290_v59 = vadd.f32 %v4247_v50, %v2251_v16  ;;  %v2274_v46 = vadd.f32 %v4247_v50, %v2235_v52 }
 0x2c8   : > { %v2096_v35 = vpop.permute.xlu0 %2095 }
 0x2c9   : > { %v2271_v15 = vadd.f32 %v4247_v50, %v2232_v4  ;;  %v2233_v14 = vmul.f32 %v2096_v35, %v4186_v12  ;;  %v2305_v35 = vmax.f32 %v2273_v44, 0.0  ;;  %v2306_v25 = vmax.f32 %v2274_v46, 0.0 }
 0x2ca   : > { %v2171_v17 = vpop.permute.xlu1 %2170 }
 0x2cb   : > { %v2248_v56 = vmul.f32 %v2171_v17, %v4172_v48  ;;  %v2303_v0 = vmax.f32 %v2271_v15, 0.0  ;;  %v2272_v38 = vadd.f32 %v4247_v50, %v2233_v14 }
 0x2cc   : > { %v2176_v7 = vpop.permute.xlu0 %2175 }
 0x2cd   : > { %v2287_v41 = vadd.f32 %v4247_v50, %v2248_v56  ;;  %v2249_v57 = vmul.f32 %v2176_v7, %v4178_v60  ;;  %v2289_v60 = vadd.f32 %v4247_v50, %v2250_v26  ;;  %v2304_v21 = vmax.f32 %v2272_v38, 0.0 }
 0x2cf   : > { %v2319_v48 = vmax.f32 %v2287_v41, 0.0  ;;  %v2288_v10 = vadd.f32 %v4247_v50, %v2249_v57  ;;  %v2321_v27 = vmax.f32 %v2289_v60, 0.0 }
 0x2d1   : > { %v2320_v33 = vmax.f32 %v2288_v10, 0.0 }
 0x2d7   : > { %2363 = vxpose.xlu0.b32.start [1/16] (narrow) %v2315_v9, 8  ;;  %v2322_v9 = vmax.f32 %v2290_v59, 0.0 }
 0x2db   : > { %2364 = vxpose.xlu0.b32.cont [2/16] (narrow) %v2316_v20, 8 }
 0x2df   : > { %2365 = vxpose.xlu0.b32.cont [3/16] (narrow) %v2317_v45, 8 }
 0x2e0   : > { %2331 = vxpose.xlu1.b32.start [1/16] (narrow) %v2299_v28, 8 }
 0x2e3   : > { %2366 = vxpose.xlu0.b32.cont [4/16] (narrow) %v2318_v39, 8 }
 0x2e4   : > { %2332 = vxpose.xlu1.b32.cont [2/16] (narrow) %v2300_v3, 8 }
 0x2e7   : > { %2367 = vxpose.xlu0.b32.cont [5/16] (narrow) %v2319_v48, 8 }
 0x2e8   : > { %2333 = vxpose.xlu1.b32.cont [3/16] (narrow) %v2301_v43, 8 }
 0x2eb   : > { %2368 = vxpose.xlu0.b32.cont [6/16] (narrow) %v2320_v33, 8 }
 0x2ec   : > { %2334 = vxpose.xlu1.b32.cont [4/16] (narrow) %v2302_v32, 8 }
 0x2ef   : > { %2369 = vxpose.xlu0.b32.cont [7/16] (narrow) %v2321_v27, 8 }
 0x2f0   : > { %2335 = vxpose.xlu1.b32.cont [5/16] (narrow) %v2303_v0, 8 }
 0x2f2   : > { %v2121_v12 = vpop.permute.xlu1 %2120 }
 0x2f3   : > { %2370 = vxpose.xlu0.b32.cont [8/16] (narrow) %v2322_v9, 8  ;;  %v2238_v55 = vmul.f32 %v4200_v1, %v2121_v12 }
 0x2f4   : > { %v2126_v42 = vpop.permute.xlu0 %2125  ;;  %2336 = vxpose.xlu1.b32.cont [6/16] (narrow) %v2304_v21, 8 }
 0x2f5   : > { %v2239_v39 = vmul.f32 %v4207_v19, %v2126_v42 }
 0x2f6   : > { %v2201_v37 = vpop.permute.xlu1 %2200 }
 0x2f7   : > { %v2278_v53 = vadd.f32 %v4247_v50, %v2239_v39 }
 0x2f8   : > { %v2206_v61 = vpop.permute.xlu0 %2205  ;;  %2337 = vxpose.xlu1.b32.cont [7/16] (narrow) %v2305_v35, 8 }
 0x2f9   : > { %v2255_v30 = vmul.f32 %v4198_v34, %v2206_v61 }
 0x2fa   : > { %v2111_v20 = vpop.permute.xlu1 %2110 }
 0x2fb   : > { %v2236_v40 = vmul.f32 %v2111_v20, %v4205_v2  ;;  %v2277_v2 = vadd.f32 %v4247_v50, %v2238_v55  ;;  %v2294_v26 = vadd.f32 %v4247_v50, %v2255_v30 }
 0x2fc   : > { %v2116_v47 = vpop.permute.xlu0 %2115  ;;  %2338 = vxpose.xlu1.b32.cont [8/16] (narrow) %v2306_v25, 8 }
 0x2fd   : > { %v2275_v17 = vadd.f32 %v4247_v50, %v2236_v40  ;;  %v2237_v13 = vmul.f32 %v2116_v47, %v4210_v49  ;;  %v2254_v49 = vmul.f32 %v4193_v51, %v2201_v37  ;;  %v2310_v51 = vmax.f32 %v2278_v53, 0.0 }
 0x2fe   : > { %v2191_v45 = vpop.permute.xlu1 %2190  ;;  %v2326_v48 = vmax.f32 %v2294_v26, 0.0 }
 0x2ff   : > { %v2307_v18 = vmax.f32 %v2275_v17, 0.0  ;;  %v2276_v56 = vadd.f32 %v4247_v50, %v2237_v13  ;;  %v2252_v5 = vmul.f32 %v2191_v45, %v4196_v22  ;;  %v2309_v22 = vmax.f32 %v2277_v2, 0.0 }
 0x300   : > { %v2196_v28 = vpop.permute.xlu0 %2195 }
 0x301   : > { %v2291_v54 = vadd.f32 %v4247_v50, %v2252_v5  ;;  %v2253_v7 = vmul.f32 %v2196_v28, %v4202_v29  ;;  %2339 = vxpose.xlu1.b32.cont [9/16] (narrow) %v2307_v18, 8  ;;  %v2308_v1 = vmax.f32 %v2276_v56, 0.0  ;;  %v2293_v29 = vadd.f32 %v4247_v50, %v2254_v49 }
 0x303   : > { %v2323_v41 = vmax.f32 %v2291_v54, 0.0  ;;  %v2292_v57 = vadd.f32 %v4247_v50, %v2253_v7  ;;  %v2325_v3 = vmax.f32 %v2293_v29, 0.0 }
 0x305   : > { %2340 = vxpose.xlu1.b32.cont [10/16] (narrow) %v2308_v1, 8  ;;  %2371 = vxpose.xlu0.b32.cont [9/16] (narrow) %v2323_v41, 8  ;;  %v2324_v19 = vmax.f32 %v2292_v57, 0.0 }
 0x309   : > { %2341 = vxpose.xlu1.b32.cont [11/16] (narrow) %v2309_v22, 8  ;;  %2372 = vxpose.xlu0.b32.cont [10/16] (narrow) %v2324_v19, 8 }
 0x30d   : > { %2342 = vxpose.xlu1.b32.cont [12/16] (narrow) %v2310_v51, 8  ;;  %2373 = vxpose.xlu0.b32.cont [11/16] (narrow) %v2325_v3, 8 }
 0x311   : > { %2374 = vxpose.xlu0.b32.cont [12/16] (narrow) %v2326_v48, 8 }
 0x312   : > { %2869 = shalt.err (!%p2866_p3)
}
 0x313   : > { %s2870_s9 = scalar_lea.hbm %s4306_s7, 256  ;;  %s2874_s23 = scalar_lea.hbm %s4403_s5, 512 }
 0x314   : > { %p2871_p4 = scmp.ne.s32.totalorder %s4306_s7, %s2870_s9  ;;  %p2875_p9 = scmp.lt.u32.totalorder %s4306_s7, %s4403_s5 }
 0x315   : > { %p2876_p10 = scmp.lt.u32.totalorder %s2874_s23, %s2870_s9  ;;  %p2878_p12 = scmp.lt.u32.totalorder %s2870_s9, %s4306_s7 }
 0x316   : > { %p2872_p7 = pnand %p2871_p4, %p3036_p5 }
 0x317   : > { %p2877_p11 = por %p2876_p10, %p2875_p9 }
 0x318   : > { %p2873_p8 = pneg %p2872_p7 }
 0x319   : > { %p2879_p13 = por %p2878_p12, %p2877_p11 }
 0x31b   : > { %p2880_p0 = pnand %p2879_p13, %p2873_p8 }
 0x31d   : > { %2883 = shalt.err (!%p2880_p0)
}
 0x31e   : > { %s2965_s10 = smov 128   ;;  %s2966_s11 = smov 8  }
 0x31f   : > { %2715 = dma.vmem_to_hbm [thread:$0]  (%p3036_p5), %s4299_s25, 256, %s4306_s7, %s2406_s8, %s2965_s10, %s2965_s10, %s2966_s11  }
 0x320   : > { %s236_s25 = scalar_lea.vmem [#allocation3], %s2543_s15  ;;  %s4357_s13 = scalar_lea.hbm %s4402_s4, %s2647_s26 }
 0x321   : > { %s2420_s7 = sshll.u32 %s236_s25, 4  ;;  %s2401_s9 = scalar_lea.sflag [#allocation4], %s4134_s14  ;;  %s4350_s7 = int_to_ptr.vmem [resolvable:$true] %s2420_s7 }
 0x322   : > { %s2884_s16 = scalar_lea.vmem %s4350_s7, 256  ;;  %s2967_s15 = smov [#allocation3]  }
 0x323   : > { %p2885_p1 = scmp.ne.s32.totalorder %s4350_s7, %s2884_s16  ;;  %s2888_s17 = sshll.u32 %s2967_s15, 4  ;;  %s2889_s17 = int_to_ptr.vmem [resolvable:$false] %s2888_s17 }
 0x324   : > { %s2890_s22 = scalar_lea.vmem %s2889_s17, 512  ;;  %p2891_p4 = scmp.lt.s32.totalorder %s4350_s7, %s2889_s17 }
 0x325   : > { %p2886_p2 = pnand %p2885_p1, %p3036_p5  ;;  %p2892_p7 = scmp.lt.s32.totalorder %s2890_s22, %s2884_s16 }
 0x327   : > { %p2887_p3 = pneg %p2886_p2  ;;  %p2893_p8 = por %p2892_p7, %p2891_p4 }
 0x329   : > { %p2894_p9 = pnand %p2893_p8, %p2887_p3 }
 0x32a   : > { %v2141_v34 = vpop.permute.xlu1 %2140 }
 0x32b   : > { %v2242_v15 = vmul.f32 %v4224_v31, %v2141_v34 }
 0x32c   : > { %v2146_v10 = vpop.permute.xlu0 %2145 }
 0x32d   : > { %v2243_v44 = vmul.f32 %v4231_v6, %v2146_v10 }
 0x32e   : > { %v2221_v43 = vpop.permute.xlu1 %2220 }
 0x32f   : > { %v2282_v12 = vadd.f32 %v4247_v50, %v2243_v44 }
 0x330   : > { %v2226_v63 = vpop.permute.xlu0 %2225 }
 0x332   : > { %v2131_v4 = vpop.permute.xlu1 %2130 }
 0x333   : > { %v2240_v60 = vmul.f32 %v2131_v4, %v4229_v11  ;;  %v2281_v11 = vadd.f32 %v4247_v50, %v2242_v15 }
 0x334   : > { %v2136_v16 = vpop.permute.xlu0 %2135 }
 0x335   : > { %v2279_v33 = vadd.f32 %v4247_v50, %v2240_v60  ;;  %v2241_v32 = vmul.f32 %v2136_v16, %v4234_v23  ;;  %v2258_v23 = vmul.f32 %v4217_v62, %v2221_v43  ;;  %v2314_v62 = vmax.f32 %v2282_v12, 0.0 }
 0x336   : > { %v2211_v14 = vpop.permute.xlu1 %2210 }
 0x337   : > { %v2311_v27 = vmax.f32 %v2279_v33, 0.0  ;;  %v2280_v59 = vadd.f32 %v4247_v50, %v2241_v32  ;;  %v2256_v58 = vmul.f32 %v2211_v14, %v4220_v8  ;;  %v2313_v8 = vmax.f32 %v2281_v11, 0.0 }
 0x338   : > { %v2216_v0 = vpop.permute.xlu0 %2215  ;;  %v2297_v42 = vadd.f32 %v4247_v50, %v2258_v23 }
 0x339   : > { %v2295_v38 = vadd.f32 %v4247_v50, %v2256_v58  ;;  %v2257_v9 = vmul.f32 %v2216_v0, %v4226_v24  ;;  %2343 = vxpose.xlu1.b32.cont [13/16] (narrow) %v2311_v27, 8  ;;  %v2312_v52 = vmax.f32 %v2280_v59, 0.0  ;;  %v2259_v24 = vmul.f32 %v4222_v36, %v2226_v63 }
 0x33a   : > { %v2329_v6 = vmax.f32 %v2297_v42, 0.0 }
 0x33b   : > { %v2327_v31 = vmax.f32 %v2295_v38, 0.0  ;;  %v2296_v21 = vadd.f32 %v4247_v50, %v2257_v9  ;;  %v2298_v46 = vadd.f32 %v4247_v50, %v2259_v24 }
 0x33d   : > { %2375 = vxpose.xlu0.b32.cont [13/16] (narrow) %v2327_v31, 8  ;;  %2344 = vxpose.xlu1.b32.cont [14/16] (narrow) %v2312_v52, 8  ;;  %v2328_v35 = vmax.f32 %v2296_v21, 0.0  ;;  %v2330_v37 = vmax.f32 %v2298_v46, 0.0 }
 0x341   : > { %2345 = vxpose.xlu1.b32.cont [15/16] (narrow) %v2313_v8, 8  ;;  %2376 = vxpose.xlu0.b32.cont [14/16] (narrow) %v2328_v35, 8 }
 0x345   : > { %2346 = vxpose.xlu1.b32.end [16/16] (narrow) %v2314_v62, 8  ;;  %2377 = vxpose.xlu0.b32.cont [15/16] (narrow) %v2329_v6, 8 }
 0x349   : > { %2378 = vxpose.xlu0.b32.end [16/16] (narrow) %v2330_v37, 8 }
 0x389   : > { %v2347_v61 = vpop.trf.xlu1 }
 0x38a   : > { %2395 = vst [vmem:[%s236_s25] sm:$0xff] %v2347_v61 }
 0x38d   : > { %v2379_v36 = vpop.trf.xlu0 }
 0x38e   : > { %2396 = vst [vmem:[%s236_s25 + $0x8] sm:$0xff] %v2379_v36 }
 0x38f   : > { %2897 = shalt.err (!%p2894_p9)
}
 0x390   : > { %s2898_s14 = scalar_lea.hbm %s4357_s13, 256  ;;  %s2902_s30 = scalar_lea.hbm %s4402_s4, 512 }
 0x391   : > { %p2899_p10 = scmp.ne.s32.totalorder %s4357_s13, %s2898_s14  ;;  %p2903_p13 = scmp.lt.u32.totalorder %s4357_s13, %s4402_s4 }
 0x392   : > { %p2904_p0 = scmp.lt.u32.totalorder %s2902_s30, %s2898_s14  ;;  %p2906_p2 = scmp.lt.u32.totalorder %s2898_s14, %s4357_s13 }
 0x393   : > { %p2900_p11 = pnand %p2899_p10, %p3036_p5 }
 0x394   : > { %p2905_p1 = por %p2904_p0, %p2903_p13 }
 0x395   : > { %p2901_p12 = pneg %p2900_p11 }
 0x396   : > { %p2907_p3 = por %p2906_p2, %p2905_p1 }
 0x398   : > { %p2908_p4 = pnand %p2907_p3, %p2901_p12 }
 0x39a   : > { %2911 = shalt.err (!%p2908_p4)
}
 0x39b   : > { %2714 = dma.vmem_to_hbm [thread:$0]  (%p3036_p5), %s4350_s7, 256, %s4357_s13, %s2401_s9  }
 0x39c PF: > { %p2725_p7 = scmp.ge.s32.totalorder %s2950_s21, 2  ;;  %s2448_s11 = sand.u32 1, %s2938_s18  }
 0x39d   : > { %s2449_s25 = scalar_lea.sflag [#allocation4], %s2448_s11 }
 0x39e   : > { %p2719_p8 = pnand %p2725_p7, %p3040_p6 }
 0x3a0   : > { %2929 = dma.done.wait (!%p2719_p8), %s2449_s25, 256  }
 0x3a1   : > { %2931 = vsyncadd (!%p2719_p8), %s2449_s25, 4294967040  ;;  %s2458_s8 = scalar_lea.sflag [#allocation6], %s2448_s11 }
 0x3a2   : > { %2933 = dma.done.wait (!%p2719_p8), %s2458_s8, 256  }
 0x3a3   : > { %2935 = vsyncadd (!%p2719_p8), %s2458_s8, 4294967040  ;;  %p19_p5 = scmp.ge.s32.totalorder %s3023_s24, 4   ;;  %s4480_s18 = smov %s2942_s19 }
 0x3a4   : > { %s4481_s19 = smov %s2946_s20  ;;  %s4482_s20 = smov %s3034_s27 }
 0x3a5   : > { %s4483_s21 = smov %s3023_s24  ;;  %21 = sbr.rel (!%p19_p5) target bundleno = 5 (0x5), region = 91 }
 0x3ac   :  { %2463 = vsyncpa [#allocation4], 1 }
 0x3ad   :  { %2465 = vsyncpa [#allocation4 + $0x1], 1 }
 0x3ae   :  { %2466 = vsyncpa [#allocation6], 1 }
 0x3af   :  { %2468 = vsyncpa [#allocation6 + $0x1], 1 }

</bundles_post_ra>
